<compile_context>
chip_gen: v6e
topology: v6e:2x2x1
jax: 0.10.0
libtpu: 0.0.40
codegen_flags: <defaults>
</compile_context>

<pallas_src>
import jax
import jax.numpy as jnp
from jax.experimental import pallas as pl
from jax.experimental.pallas import tpu as pltpu

FEAT_DIM = 512          # backbone output channels, fixed by fusion_net.fuse
DEFAULT_TILE = 1024     # <=1024 keeps the double-buffered working set inside
                        # v7x's 64 MiB VMEM; multiple of 256 (v6e/v7x MXU).


def _round_up(x, m):
    return ((x + m - 1) // m) * m


# ---------------------------------------------------------------------------
# Pass 1: backbone projection (1x1 conv Cin->512 + bias + ReLU), computed once
# per (batch, L-tile).  f1 emitted lane-dense as (L, 512), f2 in native
# (512, L) orientation so the fusion pass is a plain A @ B contraction.
# ---------------------------------------------------------------------------
def project_kernel(xl_ref, xr_ref, wt_ref, w_ref, brow_ref, bcol_ref,
                   f1_ref, f2_ref):
    xl = xl_ref[0]                      # (Cin, TL) bf16
    xr = xr_ref[0]                      # (Cin, TL) bf16

    # f1 tile in (TL, 512): contract the leading Cin dim of xl against the
    # leading Cin dim of the (Cin, 512) weight -> no transpose materializes.
    dn_cc = (((0,), (0,)), ((), ()))
    f1 = jax.lax.dot_general(xl, wt_ref[...], dn_cc,
                             preferred_element_type=jnp.float32)
    f1 = jnp.maximum(f1 + brow_ref[...], 0.0)
    f1_ref[0] = f1.astype(jnp.bfloat16)

    # f2 tile in native (512, TL): plain (512, Cin) @ (Cin, TL).
    dn_wx = (((1,), (0,)), ((), ()))
    f2 = jax.lax.dot_general(w_ref[...], xr, dn_wx,
                             preferred_element_type=jnp.float32)
    f2 = jnp.maximum(f2 + bcol_ref[...], 0.0)
    f2_ref[0] = f2.astype(jnp.bfloat16)


# ---------------------------------------------------------------------------
# Pass 2: fusion bmm, out[b, i, j] = sum_o f1[b, i, o] * f2[b, o, j].
# Pure (TM, 512) @ (512, TN) MXU matmul, bf16 operands / f32 accumulation.
# ---------------------------------------------------------------------------
def fusion_kernel(f1_ref, f2_ref, out_ref):
    out_ref[0] = jnp.dot(
        f1_ref[0], f2_ref[0],
        preferred_element_type=jnp.float32).astype(out_ref.dtype)


def fusion_net_forward(left, right, w, bias, batch_size, *,
                       tile=DEFAULT_TILE, out_dtype=jnp.float32):
    """left, right: (B, C_in, H, W) float32 NCHW.  Returns (B, 1, L, L)."""
    B, Cin, H, W = left.shape
    # torch's .squeeze() after reshape is a no-op only for batch_size > 1,
    # which is the case implemented here.
    assert B == batch_size and batch_size > 1
    L = H * W

    # bf16 inputs/weights: MXU-native operand dtype; f32 accumulation below.
    xl = left.reshape(B, Cin, L).astype(jnp.bfloat16)
    xr = right.reshape(B, Cin, L).astype(jnp.bfloat16)

    # 128-lane-aligned tile; pad L to a tile multiple so stores are unmasked
    # full-lane vst.  Padded xl/xr columns are zero, so their projected rows
    # equal relu(bias) (non-zero); harmless because the fusion contracts only
    # over the 512 feature dim and padded output rows/cols are sliced off —
    # any future in-kernel reduction over L must mask them.
    T = min(tile, _round_up(L, 128))
    L_pad = _round_up(L, T)
    if L_pad != L:
        pad = ((0, 0), (0, 0), (0, L_pad - L))
        xl = jnp.pad(xl, pad)
        xr = jnp.pad(xr, pad)

    w_bf = w.astype(jnp.bfloat16)                         # (512, Cin)
    wt_bf = w_bf.T                                        # (Cin, 512) lane-dense
    bias_row = bias.reshape(1, FEAT_DIM).astype(jnp.float32)
    bias_col = bias.reshape(FEAT_DIM, 1).astype(jnp.float32)

    n_l = L_pad // T

    # ---- projection pass --------------------------------------------------
    proj_flops = B * L_pad * (2 * Cin * FEAT_DIM) * 2
    proj_bytes = (2 * B * Cin * L_pad * 2                 # bf16 inputs
                  + 2 * Cin * FEAT_DIM * 2 + 2 * FEAT_DIM * 4
                  + 2 * B * L_pad * FEAT_DIM * 2)         # bf16 outputs

    f1, f2 = pl.pallas_call(
        project_kernel,
        out_shape=(jax.ShapeDtypeStruct((B, L_pad, FEAT_DIM), jnp.bfloat16),
                   jax.ShapeDtypeStruct((B, FEAT_DIM, L_pad), jnp.bfloat16)),
        grid_spec=pltpu.PrefetchScalarGridSpec(
            num_scalar_prefetch=0,
            grid=(B, n_l),
            in_specs=[
                pl.BlockSpec((1, Cin, T), lambda b, l: (b, 0, l)),
                pl.BlockSpec((1, Cin, T), lambda b, l: (b, 0, l)),
                pl.BlockSpec((Cin, FEAT_DIM), lambda b, l: (0, 0)),
                pl.BlockSpec((FEAT_DIM, Cin), lambda b, l: (0, 0)),
                pl.BlockSpec((1, FEAT_DIM), lambda b, l: (0, 0)),
                pl.BlockSpec((FEAT_DIM, 1), lambda b, l: (0, 0)),
            ],
            out_specs=(
                pl.BlockSpec((1, T, FEAT_DIM), lambda b, l: (b, l, 0)),
                pl.BlockSpec((1, FEAT_DIM, T), lambda b, l: (b, 0, l)),
            ),
        ),
        compiler_params=pltpu.CompilerParams(
            dimension_semantics=("parallel", "parallel"),
            vmem_limit_bytes=48 * 1024 * 1024),
        cost_estimate=pl.CostEstimate(
            flops=proj_flops, transcendentals=0, bytes_accessed=proj_bytes),
    )(xl, xr, wt_bf, w_bf, bias_row, bias_col)

    # ---- fusion pass ------------------------------------------------------
    out_itemsize = jnp.dtype(out_dtype).itemsize
    fuse_flops = B * 2 * FEAT_DIM * L_pad * L_pad
    fuse_bytes = (B * n_l * L_pad * FEAT_DIM * 2          # f1 re-read per j tile
                  + B * n_l * FEAT_DIM * L_pad * 2        # f2 re-read per i tile
                  + B * L_pad * L_pad * out_itemsize)     # output writeback

    out = pl.pallas_call(
        fusion_kernel,
        out_shape=jax.ShapeDtypeStruct((B, L_pad, L_pad), out_dtype),
        grid_spec=pltpu.PrefetchScalarGridSpec(
            num_scalar_prefetch=0,
            grid=(B, n_l, n_l),
            in_specs=[
                pl.BlockSpec((1, T, FEAT_DIM), lambda b, i, j: (b, i, 0)),
                pl.BlockSpec((1, FEAT_DIM, T), lambda b, i, j: (b, 0, j)),
            ],
            out_specs=pl.BlockSpec((1, T, T), lambda b, i, j: (b, i, j)),
        ),
        compiler_params=pltpu.CompilerParams(
            dimension_semantics=("parallel", "parallel", "parallel"),
            vmem_limit_bytes=48 * 1024 * 1024),
        cost_estimate=pl.CostEstimate(
            flops=fuse_flops, transcendentals=0, bytes_accessed=fuse_bytes),
    )(f1, f2)

    out = out[:, :L, :L]            # drop padded rows/cols (if any)
    return out[:, None, :, :]       # torch: .unsqueeze(dim=1)


def reference_forward(left, right, w, bias):
    """Pure-JAX (f32) reference of the same forward pass."""
    B, Cin, H, W = left.shape
    L = H * W
    xl = left.reshape(B, Cin, L)
    xr = right.reshape(B, Cin, L)
    f1 = jnp.maximum(jnp.einsum('oc,bcl->bol', w, xl) + bias[None, :, None], 0.0)
    f2 = jnp.maximum(jnp.einsum('oc,bcl->bol', w, xr) + bias[None, :, None], 0.0)
    out = jnp.einsum('bol,bom->blm', f1, f2)
    return out[:, None, :, :]


if __name__ == "__main__":
    key = jax.random.PRNGKey(0)
    k1, k2, k3, k4 = jax.random.split(key, 4)

    B, Cin, H, W = 2, 4, 16, 16        # L = 256 (multiple of 128 -> no padding)
    left = jax.random.normal(k1, (B, Cin, H, W), dtype=jnp.float32)
    right = jax.random.normal(k2, (B, Cin, H, W), dtype=jnp.float32)

    # deterministic backbone params (1x1 conv C_in -> 512, + bias)
    # TODO(synk): the spec's backbone is arbitrary; it is instantiated here as
    # a 1x1 conv + ReLU so the whole forward can run in Pallas; a real
    # backbone with large Cin would need Cin re-tiling.
    w = 0.1 * jax.random.normal(k3, (FEAT_DIM, Cin), dtype=jnp.float32)
    bias = 0.01 * jax.random.normal(k4, (FEAT_DIM,), dtype=jnp.float32)

    out = fusion_net_forward(left, right, w, bias, batch_size=B)
    out = jax.block_until_ready(out)

    ref = reference_forward(left, right, w, bias)
    assert out.shape == (B, 1, H * W, H * W), out.shape
    # bf16 operands (f32 accumulation) in both passes -> relaxed tolerance.
    assert jnp.allclose(out, ref, rtol=2e-2, atol=1e-2), "mismatch vs reference"

    print("KERNEL_OK")
</pallas_src>

<mosaic_0001>
module attributes {stable_mosaic.version = 11 : i64} {
  func.func @project_kernel(%arg0: i32, %arg1: i32, %arg2: memref<1x4x256xbf16, #tpu.memory_space<vmem>>, %arg3: memref<1x4x256xbf16, #tpu.memory_space<vmem>>, %arg4: memref<4x512xbf16, #tpu.memory_space<vmem>>, %arg5: memref<512x4xbf16, #tpu.memory_space<vmem>>, %arg6: memref<1x512xf32, #tpu.memory_space<vmem>>, %arg7: memref<512x1xf32, #tpu.memory_space<vmem>>, %arg8: memref<1x256x512xbf16, #tpu.memory_space<vmem>>, %arg9: memref<1x512x256xbf16, #tpu.memory_space<vmem>>) attributes {dimension_semantics = [#tpu.dimension_semantics<parallel>, #tpu.dimension_semantics<parallel>], iteration_bounds = array<i64: 2, 1>, scalar_prefetch = 0 : i64, scratch_operands = 0 : i64, tpu.core_type = #tpu.core_type<tc>, window_params = [{transform_indices = @transform_0, window_bounds = array<i64: 1, 4, 256>}, {transform_indices = @transform_1, window_bounds = array<i64: 1, 4, 256>}, {pipeline_mode = #tpu.pipeline_mode<synchronous>, transform_indices = @transform_2, window_bounds = array<i64: 4, 512>}, {pipeline_mode = #tpu.pipeline_mode<synchronous>, transform_indices = @transform_3, window_bounds = array<i64: 512, 4>}, {pipeline_mode = #tpu.pipeline_mode<synchronous>, transform_indices = @transform_4, window_bounds = array<i64: 1, 512>}, {pipeline_mode = #tpu.pipeline_mode<synchronous>, transform_indices = @transform_5, window_bounds = array<i64: 512, 1>}, {transform_indices = @transform_6, window_bounds = array<i64: 1, 256, 512>}, {transform_indices = @transform_7, window_bounds = array<i64: 1, 512, 256>}]} {
    %c0 = arith.constant 0 : index
    %c0_0 = arith.constant 0 : index
    %c0_1 = arith.constant 0 : index
    %0 = vector.load %arg2[%c0, %c0_0, %c0_1] : memref<1x4x256xbf16, #tpu.memory_space<vmem>>, vector<1x4x256xbf16>
    %1 = vector.shape_cast %0 : vector<1x4x256xbf16> to vector<4x256xbf16>
    %c0_2 = arith.constant 0 : index
    %c0_3 = arith.constant 0 : index
    %c0_4 = arith.constant 0 : index
    %2 = vector.load %arg3[%c0_2, %c0_3, %c0_4] : memref<1x4x256xbf16, #tpu.memory_space<vmem>>, vector<1x4x256xbf16>
    %3 = vector.shape_cast %2 : vector<1x4x256xbf16> to vector<4x256xbf16>
    %c0_5 = arith.constant 0 : index
    %c0_6 = arith.constant 0 : index
    %4 = vector.load %arg4[%c0_5, %c0_6] : memref<4x512xbf16, #tpu.memory_space<vmem>>, vector<4x512xbf16>
    %cst = arith.constant dense<0.000000e+00> : vector<256x512xf32>
    %5 = tpu.matmul %1, %4, %cst {dimension_numbers = #tpu.dot_dimension_numbers<[0], [0], [1], [1], [0, 1, 1, 1], [], []>} : vector<4x256xbf16>, vector<4x512xbf16>, vector<256x512xf32> -> vector<256x512xf32>
    %c0_7 = arith.constant 0 : index
    %c0_8 = arith.constant 0 : index
    %6 = vector.load %arg6[%c0_7, %c0_8] : memref<1x512xf32, #tpu.memory_space<vmem>>, vector<1x512xf32>
    %7 = vector.broadcast %6 : vector<1x512xf32> to vector<256x512xf32>
    %8 = arith.addf %5, %7 : vector<256x512xf32>
    %cst_9 = arith.constant 0.000000e+00 : f32
    %9 = vector.broadcast %cst_9 : f32 to vector<256x512xf32>
    %10 = arith.maximumf %8, %9 : vector<256x512xf32>
    %11 = arith.truncf %10 : vector<256x512xf32> to vector<256x512xbf16>
    %c0_10 = arith.constant 0 : index
    %c0_11 = arith.constant 0 : index
    %c0_12 = arith.constant 0 : index
    %12 = vector.load %arg8[%c0_10, %c0_11, %c0_12] : memref<1x256x512xbf16, #tpu.memory_space<vmem>>, vector<1x256x512xbf16>
    %13 = vector.shape_cast %12 : vector<1x256x512xbf16> to vector<256x512xbf16>
    %14 = vector.shape_cast %11 : vector<256x512xbf16> to vector<1x256x512xbf16>
    tpu.vector_store %arg8[%c0_10, %c0_11, %c0_12], %14 {strides = array<i32>} : memref<1x256x512xbf16, #tpu.memory_space<vmem>>, vector<1x256x512xbf16>,
    %c0_13 = arith.constant 0 : index
    %c0_14 = arith.constant 0 : index
    %15 = vector.load %arg5[%c0_13, %c0_14] : memref<512x4xbf16, #tpu.memory_space<vmem>>, vector<512x4xbf16>
    %cst_15 = arith.constant dense<0.000000e+00> : vector<512x256xf32>
    %16 = tpu.matmul %15, %3, %cst_15 {dimension_numbers = #tpu.dot_dimension_numbers<[1], [0], [0], [1], [0, 0, 1, 1], [], []>} : vector<512x4xbf16>, vector<4x256xbf16>, vector<512x256xf32> -> vector<512x256xf32>
    %c0_16 = arith.constant 0 : index
    %c0_17 = arith.constant 0 : index
    %17 = vector.load %arg7[%c0_16, %c0_17] : memref<512x1xf32, #tpu.memory_space<vmem>>, vector<512x1xf32>
    %18 = vector.broadcast %17 : vector<512x1xf32> to vector<512x256xf32>
    %19 = arith.addf %16, %18 : vector<512x256xf32>
    %cst_18 = arith.constant 0.000000e+00 : f32
    %20 = vector.broadcast %cst_18 : f32 to vector<512x256xf32>
    %21 = arith.maximumf %19, %20 : vector<512x256xf32>
    %22 = arith.truncf %21 : vector<512x256xf32> to vector<512x256xbf16>
    %c0_19 = arith.constant 0 : index
    %c0_20 = arith.constant 0 : index
    %c0_21 = arith.constant 0 : index
    %23 = vector.load %arg9[%c0_19, %c0_20, %c0_21] : memref<1x512x256xbf16, #tpu.memory_space<vmem>>, vector<1x512x256xbf16>
    %24 = vector.shape_cast %23 : vector<1x512x256xbf16> to vector<512x256xbf16>
    %25 = vector.shape_cast %22 : vector<512x256xbf16> to vector<1x512x256xbf16>
    tpu.vector_store %arg9[%c0_19, %c0_20, %c0_21], %25 {strides = array<i32>} : memref<1x512x256xbf16, #tpu.memory_space<vmem>>, vector<1x512x256xbf16>,
    return
  }
  func.func @transform_0(%arg0: i32, %arg1: i32) -> (i32, i32, i32) {
    %c0_i32 = arith.constant 0 : i32
    %c0_i32_0 = arith.constant 0 : i32
    return %arg0, %c0_i32, %arg1 : i32, i32, i32
  }
  func.func @transform_1(%arg0: i32, %arg1: i32) -> (i32, i32, i32) {
    %c0_i32 = arith.constant 0 : i32
    %c0_i32_0 = arith.constant 0 : i32
    return %arg0, %c0_i32, %arg1 : i32, i32, i32
  }
  func.func @transform_2(%arg0: i32, %arg1: i32) -> (i32, i32) {
    %c0_i32 = arith.constant 0 : i32
    %c0_i32_0 = arith.constant 0 : i32
    %c0_i32_1 = arith.constant 0 : i32
    return %c0_i32, %c0_i32_0 : i32, i32
  }
  func.func @transform_3(%arg0: i32, %arg1: i32) -> (i32, i32) {
    %c0_i32 = arith.constant 0 : i32
    %c0_i32_0 = arith.constant 0 : i32
    %c0_i32_1 = arith.constant 0 : i32
    return %c0_i32, %c0_i32_0 : i32, i32
  }
  func.func @transform_4(%arg0: i32, %arg1: i32) -> (i32, i32) {
    %c0_i32 = arith.constant 0 : i32
    %c0_i32_0 = arith.constant 0 : i32
    %c0_i32_1 = arith.constant 0 : i32
    return %c0_i32, %c0_i32_0 : i32, i32
  }
  func.func @transform_5(%arg0: i32, %arg1: i32) -> (i32, i32) {
    %c0_i32 = arith.constant 0 : i32
    %c0_i32_0 = arith.constant 0 : i32
    %c0_i32_1 = arith.constant 0 : i32
    return %c0_i32, %c0_i32_0 : i32, i32
  }
  func.func @transform_6(%arg0: i32, %arg1: i32) -> (i32, i32, i32) {
    %c0_i32 = arith.constant 0 : i32
    %c0_i32_0 = arith.constant 0 : i32
    return %arg0, %arg1, %c0_i32 : i32, i32, i32
  }
  func.func @transform_7(%arg0: i32, %arg1: i32) -> (i32, i32, i32) {
    %c0_i32 = arith.constant 0 : i32
    %c0_i32_0 = arith.constant 0 : i32
    return %arg0, %c0_i32, %arg1 : i32, i32, i32
  }
}

</mosaic_0001>

<bundles_post_ra>
// kernel: tpu_custom_call.1
= control target key start
LH: loop header
LB: loop body
LE: loop exit
PB: predicated region body
PF: predicated region fallthrough
CT: control target
= control target key end

     0   :  { %13 = vsyncpa [#allocation3], 0  ;;  %s4870_s0 = inlined_call_operand.vmem [shape: bf16[2,4,256], index: 0, kind: input, shape index: {}]   ;;  %s4871_s1 = inlined_call_operand.vmem [shape: bf16[2,4,256], index: 1, kind: input, shape index: {}]   ;;  %s4872_s2 = inlined_call_operand.vmem [shape: bf16[4,512], index: 2, kind: input, shape index: {}]   ;;  %s4873_s3 = inlined_call_operand.vmem [shape: bf16[512,4], index: 3, kind: input, shape index: {}]   ;;  %s4874_s4 = inlined_call_operand.vmem [shape: f32[1,512], index: 4, kind: input, shape index: {}]   ;;  %s4875_s5 = inlined_call_operand.vmem [shape: f32[512,1], index: 5, kind: input, shape index: {}]   ;;  %s4876_s6 = inlined_call_operand.hbm [shape: bf16[2,256,512], index: 6, kind: output, shape index: {0}]   ;;  %s4877_s7 = inlined_call_operand.hbm [shape: bf16[2,512,256], index: 7, kind: output, shape index: {1}]  }
   0x1   :  { %15 = vsyncpa [#allocation3 + $0x1], 0 }
   0x2   :  { %16 = vsyncpa [#allocation5], 0 }
   0x3   :  { %18 = vsyncpa [#allocation5 + $0x1], 0  ;;  %s3927_s24 = smov 0   ;;  %s3929_s25 = smov 0  }
   0x4   :  { %s3931_s26 = smov 0   ;;  %s3933_s27 = smov 0  }
   0x5   :  { %s3935_s28 = smov 0   ;;  %s3937_s29 = smov 0  }
   0x6 LB: > { %s3289_s30 = sadd.s32 4294967295, %s3877_s29   ;;  %s3290_s8 = sadd.s32 4294967294, %s3877_s29   ;;  %s3877_s29 = sphi %s3937_s29, %s24_s29   ;;  %s3873_s28 = sphi %s3935_s28, %s4887_s28   ;;  %s3869_s27 = sphi %s3933_s27, %s4886_s27   ;;  %s3865_s26 = sphi %s3931_s26, %s4885_s26   ;;  %s3861_s25 = sphi %s3929_s25, %s4884_s25   ;;  %s3857_s24 = sphi %s3927_s24, %s4883_s24  }
   0x7   : > { %s36_s9 = sadd.s32 1, %s3873_s28  ;;  %s185_s10 = sadd.s32 1, %s3865_s26 }
   0x8   : > { %p38_p0 = scmp.ge.s32.totalorder %s36_s9, 2  ;;  %p195_p1 = scmp.ne.s32.totalorder %s3865_s26, %s3861_s25 }
   0x9   : > { %p196_p2 = scmp.eq.s32.totalorder %s3289_s30, 1  ;;  %p201_p3 = scmp.ne.s32.totalorder %s3861_s25, %s3857_s24 }
   0xa   : > { %s4889_s9 = smov (%p38_p0, %s36_s9), 0  ;;  %p202_p5 = scmp.eq.s32.totalorder %s3290_s8, 1 }
   0xb   : > { %p3967_p4 = por %p196_p2, %p195_p1  ;;  %s180_s12 = ssub.s32 %s3873_s28, %s4889_s9 }
   0xc   : > { %p3293_p6 = scmp.ge.s32.totalorder %s3877_s29, 1  ;;  %p183_p7 = scmp.eq.s32.totalorder %s180_s12, 0 }
   0xd   : > { %p3974_p8 = por %p202_p5, %p201_p3  ;;  %p286_p9 = scmp.lt.s32.totalorder %s3877_s29, 3 }
   0xe   : > { %s3980_s14 = scalar_select %p183_p7, %s3865_s26, %s185_s10  }
   0xf   : > { %p287_p10 = pnand %p3293_p6, %p286_p9 }
  0x10   : > { %p337_p11 = scmp.lt.s32.totalorder (!%p287_p10), %s3869_s27, 1  ;;  %s4399_s21 = sand.u32 (!%p287_p10), 1, %s3861_s25  }
  0x11   : > { %290 = sbr.rel (%p287_p10) target bundleno = 603 (0x25b), region = 44 }
  0x16   : > { %v3879_v0 = vmov 0   ;;  %s338_s15 = scalar_select %p337_p11, %s3869_s27, 1  ;;  %v364_v1 = vlaneseq  ;;  %vm494_vm0 = vcmask 1041408   ;;  %v3737_v7 = vld [vmem:[%s4873_s3] sm:$0xff]   ;;  %vm445_vm1 = vcmask 31744   ;;  %v1534_v19 = vld [vmem:[%s4875_s5 + $0x8] sm:$0xff] }
  0x17   : > { %2220 = vmatprep.mubr.bf16.mxu0 %v3879_v0  ;;  %539 = vmatprep.mubr.bf16.mxu1 %v3879_v0  ;;  %v362_v10 = vld [vmem:[%s4874_s4] sm:$0xf]  ;;  %v3880_v13 = vmov 1983009808   ;;  %v3738_v20 = vld [vmem:[%s4873_s3 + $0x8] sm:$0xff]   ;;  %v1535_v24 = vld [vmem:[%s4875_s5 + $0x10] sm:$0xff] }
  0x18   : > { %3735 = vset.pattern.permute.xlu1 %v3879_v0  ;;  %s3537_s16 = sshll.u32 %s338_s15, 2  ;;  %v3994_v6 = vshrl.u32 %v364_v1, 7  ;;  %v430_v14 = vunpack.c.l.s4 %v3880_v13  ;;  %v1533_v15 = vld [vmem:[%s4875_s5] sm:$0xff]  ;;  %v1536_v29 = vld [vmem:[%s4875_s5 + $0x18] sm:$0xff]  ;;  %v3739_v30 = vld [vmem:[%s4873_s3 + $0x10] sm:$0xff]  }
  0x19   : > { %s344_s19 = scalar_lea.vmem %s4870_s0, %s3537_s16  ;;  %s354_s22 = scalar_lea.vmem %s4871_s1, %s3537_s16  ;;  %v361_v16 = vld [vmem:[%s4872_s2] sm:$0xff]  ;;  %1599 = vperm.xlu1 %3735, %v1533_v15   ;;  %v1538_v32 = vld [vmem:[%s4875_s5 + $0x28] sm:$0xff]  ;;  %v3740_v34 = vld [vmem:[%s4873_s3 + $0x18] sm:$0xff]  }
  0x1a   : > { %v3300_v2 = vld.sshfl [vmem:[%s344_s19] sm:$0x33 pattern:$0x76325410]  ;;  %v374_v8 = vsub.s32 2, %v3994_v6  ;;  %v378_v9 = vsub.s32 3, %v3994_v6  ;;  %v428_v17 = vcombine.high %v361_v16, %v361_v16  ;;  %v431_v18 = vunpack.c.0.s8 %v430_v14 }
  0x1b   : > { %395 = vxpose.xlu0.c.b16.start.end [1/1] (short) %v3300_v2, 128  ;;  %v3431_v3 = vld.sshfl [vmem:[%s354_s22] sm:$0x33 pattern:$0x76325410]  ;;  %v392_v33 = vcombine.high %v3300_v2, %v3300_v2  ;;  %v1539_v35 = vld [vmem:[%s4875_s5 + $0x30] sm:$0xff]  ;;  %v1540_v36 = vld [vmem:[%s4875_s5 + $0x38] sm:$0xff] }
  0x1c   : > { %v2085_v4 = vcombine.high %v3431_v3, %v3431_v3  ;;  %v2183_v5 = vsel %vm494_vm0, %v3431_v3, 0  ;;  %v4006_v11 = vrot.slane %v362_v10, %v374_v8  ;;  %v4008_v12 = vrot.slane %v362_v10, %v378_v9  ;;  %v1537_v31 = vld [vmem:[%s4875_s5 + $0x20] sm:$0xff]  ;;  %v1543_v39 = vld [vmem:[%s4875_s5 + $0x50] sm:$0xff]  ;;  %v3742_v40 = vld [vmem:[%s4873_s3 + $0x28] sm:$0xff]   ;;  %s3294_s22 = sshll.u32 %s4399_s21, 9  ;;  %s3881_s16 = smov [#allocation4]  }
  0x1d   : > { %v434_v21 = vsub.s32 %v431_v18, %v3994_v6  ;;  %1604 = vperm.xlu1 %3735, %v1534_v19   ;;  %v3741_v37 = vld [vmem:[%s4873_s3 + $0x20] sm:$0xff]   ;;  %v1544_v41 = vld [vmem:[%s4875_s5 + $0x58] sm:$0xff]  ;;  %v3743_v43 = vld [vmem:[%s4873_s3 + $0x30] sm:$0xff]   ;;  %s4422_s12 = scalar_lea.vmem [#allocation4], %s3294_s22  ;;  %s4532_s19 = scalar_lea.vmem [#allocation2], %s3294_s22 }
  0x1e   : > { %3432 = vmatprep.subr.msk.bf16.mxu0 %vm494_vm0, %v2085_v4  ;;  %v1541_v38 = vld [vmem:[%s4875_s5 + $0x40] sm:$0xff]  ;;  %v1546_v44 = vld [vmem:[%s4875_s5 + $0x68] sm:$0xff]  ;;  %v1547_v45 = vld [vmem:[%s4875_s5 + $0x70] sm:$0xff]  ;;  %s4878_s22 = sshll.u32 %s3869_s27, 13  ;;  %s3157_s20 = sshll.u32 %s4422_s12, 4  ;;  %s4720_s20 = int_to_ptr.vmem [resolvable:$true] %s3157_s20 }
  0x1f   : > { %2203 = vmatpush1.bf16.msra.mxu0 %v2183_v5  ;;  %v435_v22 = vrot.slane %v361_v16, %v434_v21  ;;  %v442_v23 = vrot.slane %v428_v17, %v434_v21  ;;  %v1545_v42 = vld [vmem:[%s4875_s5 + $0x60] sm:$0xff]  ;;  %v3744_v46 = vld [vmem:[%s4873_s3 + $0x38] sm:$0xff]   ;;  %v1550_v50 = vld [vmem:[%s4875_s5 + $0x88] sm:$0xff]  ;;  %s4718_s8 = scalar_lea.hbm %s4877_s7, %s4878_s22  ;;  %s3771_s15 = scalar_lea.vmem %s4720_s20, 8192 }
  0x20   : > { %v1548_v47 = vld [vmem:[%s4875_s5 + $0x78] sm:$0xff]  ;;  %v1549_v48 = vld [vmem:[%s4875_s5 + $0x80] sm:$0xff]  ;;  %v1542_v51 = vld [vmem:[%s4875_s5 + $0x48] sm:$0xff]  ;;  %p3772_p12 = scmp.ne.s32.totalorder %s4720_s20, %s3771_s15  ;;  %s3775_s17 = sshll.u32 %s3881_s16, 4  ;;  %s3776_s17 = int_to_ptr.vmem [resolvable:$false] %s3775_s17 }
  0x21   : > { %v443_v25 = vcombine.high %v435_v22, %v435_v22  ;;  %v496_v26 = vsel %vm494_vm0, %v435_v22, 0  ;;  %v444_v27 = vcombine.high %v442_v23, %v442_v23  ;;  %v4031_v28 = vsel %vm494_vm0, %v442_v23, 0  ;;  %1609 = vperm.xlu1 %3735, %v1535_v24   ;;  %v3745_v49 = vld [vmem:[%s4873_s3 + $0x40] sm:$0xff]   ;;  %v1551_v52 = vld [vmem:[%s4875_s5 + $0x90] sm:$0xff]  ;;  %v3746_v53 = vld [vmem:[%s4873_s3 + $0x48] sm:$0xff]   ;;  %s3777_s18 = scalar_lea.vmem %s3776_s17, 16384  ;;  %p3778_p1 = scmp.lt.s32.totalorder %s4720_s20, %s3776_s17 }
  0x22   : > { %3433 = vmatmul.mubr.msk.bf16.vlgmr.msra.gmra.mxu0 %vm445_vm1, %v3737_v7  ;;  %v1553_v54 = vld [vmem:[%s4875_s5 + $0xa0] sm:$0xff]  ;;  %v1555_v55 = vld [vmem:[%s4875_s5 + $0xb0] sm:$0xff]  ;;  %v3749_v59 = vld [vmem:[%s4873_s3 + $0x58] sm:$0xff]   ;;  %p3773_p13 = pnand %p3772_p12, %p3967_p4  ;;  %p3779_p2 = scmp.lt.s32.totalorder %s3777_s18, %s3771_s15 }
  0x23   : > { %2230 = vmatprep.mubr.bf16.mxu0 %v3879_v0  ;;  %3301 = vmatprep.subr.msk.bf16.mxu1 %vm494_vm0, %v443_v25  ;;  %v3747_v56 = vld [vmem:[%s4873_s3 + $0x50] sm:$0xff]   ;;  %v1557_v57 = vld [vmem:[%s4875_s5 + $0xc0] sm:$0xff]  ;;  %v3751_v4 = vld [vmem:[%s4873_s3 + $0x68] sm:$0xff]  }
  0x24   : > { %522 = vmatpush1.bf16.msra.mxu1 %v496_v26  ;;  %v1559_v58 = vld [vmem:[%s4875_s5 + $0xd0] sm:$0xff]  ;;  %v1561_v60 = vld [vmem:[%s4875_s5 + $0xe0] sm:$0xff]  ;;  %v1552_v8 = vld [vmem:[%s4875_s5 + $0x98] sm:$0xff]  ;;  %p3774_p0 = pneg %p3773_p13  ;;  %p3780_p3 = por %p3779_p2, %p3778_p1 }
  0x25   : > { %3318 = vmatprep.subr.msk.bf16.mxu1 %vm494_vm0, %v444_v27  ;;  %1614 = vperm.xlu1 %3735, %v1536_v29   ;;  %v1563_v62 = vld [vmem:[%s4875_s5 + $0xf0] sm:$0xff]  ;;  %v3750_v63 = vld [vmem:[%s4873_s3 + $0x60] sm:$0xff]   ;;  %v1554_v14 = vld [vmem:[%s4875_s5 + $0xa8] sm:$0xff] }
  0x26   : > { %v1565_v1 = vld [vmem:[%s4875_s5 + $0x100] sm:$0xff]  ;;  %v1567_v3 = vld [vmem:[%s4875_s5 + $0x110] sm:$0xff]  ;;  %v1556_v17 = vld [vmem:[%s4875_s5 + $0xb8] sm:$0xff]  ;;  %p3781_p5 = pnand %p3780_p3, %p3774_p0 }
  0x27   : > { %v1569_v5 = vld [vmem:[%s4875_s5 + $0x120] sm:$0xff]  ;;  %v1571_v9 = vld [vmem:[%s4875_s5 + $0x130] sm:$0xff]  ;;  %v3753_v18 = vld [vmem:[%s4873_s3 + $0x78] sm:$0xff]  }
  0x28   : > { %v3752_v10 = vld [vmem:[%s4873_s3 + $0x70] sm:$0xff]   ;;  %v1573_v13 = vld [vmem:[%s4875_s5 + $0x140] sm:$0xff]  ;;  %v1560_v23 = vld [vmem:[%s4875_s5 + $0xd8] sm:$0xff] }
  0x29   : > { %1619 = vperm.xlu1 %3735, %v1537_v31   ;;  %v1575_v16 = vld [vmem:[%s4875_s5 + $0x150] sm:$0xff]  ;;  %v1577_v19 = vld [vmem:[%s4875_s5 + $0x160] sm:$0xff]  ;;  %v1562_v26 = vld [vmem:[%s4875_s5 + $0xe8] sm:$0xff] }
  0x2a   : > { %3434 = vmatmul.mubr.msk.bf16.gmra.mxu0 %vm445_vm1, %v3738_v20  ;;  %v1558_v20 = vld [vmem:[%s4875_s5 + $0xc8] sm:$0xff]  ;;  %v1579_v22 = vld [vmem:[%s4875_s5 + $0x170] sm:$0xff]  ;;  %v3754_v24 = vld [vmem:[%s4873_s3 + $0x80] sm:$0xff]  }
  0x2b   : > { %2240 = vmatprep.mubr.bf16.mxu0 %v3879_v0  ;;  %v1581_v25 = vld [vmem:[%s4875_s5 + $0x180] sm:$0xff]  ;;  %v1564_v29 = vld [vmem:[%s4875_s5 + $0xf8] sm:$0xff] }
  0x2c   : > { %v1585_v31 = vld [vmem:[%s4875_s5 + $0x1a0] sm:$0xff] }
  0x2d   : > { %1624 = vperm.xlu1 %3735, %v1538_v32   ;;  %v1566_v32 = vld [vmem:[%s4875_s5 + $0x108] sm:$0xff] }
  0x31   : > { %1629 = vperm.xlu1 %3735, %v1539_v35   ;;  %v1568_v35 = vld [vmem:[%s4875_s5 + $0x118] sm:$0xff] }
  0x32   : > { %3435 = vmatmul.mubr.msk.bf16.gmra.mxu0 %vm445_vm1, %v3739_v30  ;;  %v3755_v30 = vld [vmem:[%s4873_s3 + $0x88] sm:$0xff]  }
  0x33   : > { %2250 = vmatprep.mubr.bf16.mxu0 %v3879_v0 }
  0x35   : > { %1634 = vperm.xlu1 %3735, %v1540_v36   ;;  %v3756_v36 = vld [vmem:[%s4873_s3 + $0x90] sm:$0xff]  }
  0x38   : > { %411 = vxpose.xlu0.c.b16.start.end [1/1] (short) %v392_v33, 128 }
  0x39   : > { %1639 = vperm.xlu1 %3735, %v1541_v38   ;;  %v1570_v38 = vld [vmem:[%s4875_s5 + $0x128] sm:$0xff] }
  0x3a   : > { %3436 = vmatmul.mubr.msk.bf16.gmra.mxu0 %vm445_vm1, %v3740_v34  ;;  %v1587_v34 = vld [vmem:[%s4875_s5 + $0x1b0] sm:$0xff] }
  0x3b   : > { %2260 = vmatprep.mubr.bf16.mxu0 %v3879_v0 }
  0x3d   : > { %1649 = vperm.xlu1 %3735, %v1543_v39  }
  0x41   : > { %3736 = vset.pattern.permute.xlu0 %v3879_v0  ;;  %1654 = vperm.xlu1 %3735, %v1544_v41   ;;  %v1572_v41 = vld [vmem:[%s4875_s5 + $0x138] sm:$0xff] }
  0x42   : > { %3437 = vmatmul.mubr.msk.bf16.gmra.mxu0 %vm445_vm1, %v3741_v37  ;;  %v1589_v37 = vld [vmem:[%s4875_s5 + $0x1c0] sm:$0xff] }
  0x43   : > { %2270 = vmatprep.mubr.bf16.mxu0 %v3879_v0 }
  0x45   : > { %1659 = vperm.xlu1 %3735, %v1545_v42   ;;  %v3757_v42 = vld [vmem:[%s4873_s3 + $0x98] sm:$0xff]  }
  0x49   : > { %1664 = vperm.xlu1 %3735, %v1546_v44   ;;  %v1574_v44 = vld [vmem:[%s4875_s5 + $0x148] sm:$0xff] }
  0x4a   : > { %3438 = vmatmul.mubr.msk.bf16.gmra.mxu0 %vm445_vm1, %v3742_v40  ;;  %v1591_v40 = vld [vmem:[%s4875_s5 + $0x1d0] sm:$0xff] }
  0x4b   : > { %2280 = vmatprep.mubr.bf16.mxu0 %v3879_v0 }
  0x4d   : > { %1669 = vperm.xlu1 %3735, %v1547_v45  }
  0x51   : > { %1674 = vperm.xlu1 %3735, %v1548_v47   ;;  %v1576_v47 = vld [vmem:[%s4875_s5 + $0x158] sm:$0xff] }
  0x52   : > { %3439 = vmatmul.mubr.msk.bf16.gmra.mxu0 %vm445_vm1, %v3743_v43  ;;  %v1593_v43 = vld [vmem:[%s4875_s5 + $0x1e0] sm:$0xff] }
  0x53   : > { %2290 = vmatprep.mubr.bf16.mxu0 %v3879_v0 }
  0x55   : > { %1679 = vperm.xlu1 %3735, %v1549_v48   ;;  %v3758_v48 = vld [vmem:[%s4873_s3 + $0xa0] sm:$0xff]  }
  0x59   : > { %1684 = vperm.xlu1 %3735, %v1550_v50  }
  0x5a   : > { %3440 = vmatmul.mubr.msk.bf16.gmra.mxu0 %vm445_vm1, %v3744_v46  ;;  %v1595_v46 = vld [vmem:[%s4875_s5 + $0x1f0] sm:$0xff] }
  0x5b   : > { %2300 = vmatprep.mubr.bf16.mxu0 %v3879_v0 }
  0x5d   : > { %1644 = vperm.xlu0 %3736, %v1542_v51   ;;  %1689 = vperm.xlu1 %3735, %v1551_v52   ;;  %v1580_v52 = vld [vmem:[%s4875_s5 + $0x178] sm:$0xff] }
  0x61   : > { %1699 = vperm.xlu1 %3735, %v1553_v54   ;;  %1694 = vperm.xlu0 %3736, %v1552_v8   ;;  %v1582_v54 = vld [vmem:[%s4875_s5 + $0x188] sm:$0xff] }
  0x62   : > { %3441 = vmatmul.mubr.msk.bf16.gmra.mxu0 %vm445_vm1, %v3745_v49  ;;  %v1578_v49 = vld [vmem:[%s4875_s5 + $0x168] sm:$0xff] }
  0x63   : > { %2310 = vmatprep.mubr.bf16.mxu0 %v3879_v0 }
  0x65   : > { %1709 = vperm.xlu1 %3735, %v1555_v55   ;;  %1704 = vperm.xlu0 %3736, %v1554_v14  }
  0x69   : > { %1719 = vperm.xlu1 %3735, %v1557_v57   ;;  %1714 = vperm.xlu0 %3736, %v1556_v17   ;;  %v1584_v57 = vld [vmem:[%s4875_s5 + $0x198] sm:$0xff] }
  0x6a   : > { %3442 = vmatmul.mubr.msk.bf16.gmra.mxu0 %vm445_vm1, %v3746_v53  ;;  %v3759_v53 = vld [vmem:[%s4873_s3 + $0xa8] sm:$0xff]  }
  0x6b   : > { %2320 = vmatprep.mubr.bf16.mxu0 %v3879_v0 }
  0x6d   : > { %1729 = vperm.xlu1 %3735, %v1559_v58   ;;  %1724 = vperm.xlu0 %3736, %v1558_v20   ;;  %v3760_v58 = vld [vmem:[%s4873_s3 + $0xb0] sm:$0xff]  }
  0x71   : > { %1739 = vperm.xlu1 %3735, %v1561_v60   ;;  %1734 = vperm.xlu0 %3736, %v1560_v23   ;;  %v1586_v60 = vld [vmem:[%s4875_s5 + $0x1a8] sm:$0xff]  ;;  %v1596_v23 = vld [vmem:[%s4875_s5 + $0x1f8] sm:$0xff] }
  0x72   : > { %3443 = vmatmul.mubr.msk.bf16.gmra.mxu0 %vm445_vm1, %v3747_v56 }
  0x73   : > { %2330 = vmatprep.mubr.bf16.mxu0 %v3879_v0 }
  0x75   : > { %1749 = vperm.xlu1 %3735, %v1563_v62   ;;  %1744 = vperm.xlu0 %3736, %v1562_v26  }
  0x79   : > { %1759 = vperm.xlu1 %3735, %v1565_v1   ;;  %1754 = vperm.xlu0 %3736, %v1564_v29   ;;  %v3761_v1 = vld [vmem:[%s4873_s3 + $0xb8] sm:$0xff]  }
  0x7a   : > { %3444 = vmatmul.mubr.msk.bf16.gmra.mxu0 %vm445_vm1, %v3749_v59 }
  0x7b   : > { %2340 = vmatprep.mubr.bf16.mxu0 %v3879_v0 }
  0x7d   : > { %v4149_v61 = vpop.trf.xlu0  ;;  %1769 = vperm.xlu1 %3735, %v1567_v3   ;;  %1764 = vperm.xlu0 %3736, %v1566_v32  }
  0x7e   : > { %3302 = vmatmul.mubr.msk.bf16.vlgmr.msra.gmra.mxu1 %vm445_vm1, %v4149_v61 }
  0x7f   : > { %715 = vmatpush1.bf16.msra.mxu1 %v4031_v28  ;;  %549 = vmatprep.mubr.bf16.mxu1 %v3879_v0  ;;  %v1583_v28 = vld [vmem:[%s4875_s5 + $0x190] sm:$0xff] }
  0x81   : > { %v4165_v2 = vpop.trf.xlu0  ;;  %1779 = vperm.xlu1 %3735, %v1569_v5   ;;  %1774 = vperm.xlu0 %3736, %v1568_v35  }
  0x82   : > { %3445 = vmatmul.mubr.msk.bf16.gmra.mxu0 %vm445_vm1, %v3750_v63  ;;  %v1588_v63 = vld [vmem:[%s4875_s5 + $0x1b8] sm:$0xff] }
  0x83   : > { %2350 = vmatprep.mubr.bf16.mxu0 %v3879_v0 }
  0x85   : > { %v4181_v7 = vpop.trf.xlu0  ;;  %1789 = vperm.xlu1 %3735, %v1571_v9   ;;  %1784 = vperm.xlu0 %3736, %v1570_v38   ;;  %v1592_v9 = vld [vmem:[%s4875_s5 + $0x1d8] sm:$0xff] }
  0x86   : > { %3303 = vmatmul.mubr.msk.bf16.gmra.mxu1 %vm445_vm1, %v4165_v2 }
  0x87   : > { %559 = vmatprep.mubr.bf16.mxu1 %v3879_v0 }
  0x89   : > { %v4203_v15 = vpop.trf.xlu0  ;;  %1799 = vperm.xlu1 %3735, %v1573_v13   ;;  %1794 = vperm.xlu0 %3736, %v1572_v41   ;;  %v1594_v13 = vld [vmem:[%s4875_s5 + $0x1e8] sm:$0xff] }
  0x8a   : > { %3446 = vmatmul.mubr.msk.bf16.gmra.mxu0 %vm445_vm1, %v3751_v4  ;;  %v1590_v4 = vld [vmem:[%s4875_s5 + $0x1c8] sm:$0xff] }
  0x8b   : > { %2360 = vmatprep.mubr.bf16.mxu0 %v3879_v0 }
  0x8d   : > { %1809 = vperm.xlu1 %3735, %v1575_v16   ;;  %v4225_v21 = vpop.trf.xlu0  ;;  %1804 = vperm.xlu0 %3736, %v1574_v44  }
  0x8e   : > { %3304 = vmatmul.mubr.msk.bf16.gmra.mxu1 %vm445_vm1, %v4181_v7 }
  0x8f   : > { %569 = vmatprep.mubr.bf16.mxu1 %v3879_v0 }
  0x91   : > { %1819 = vperm.xlu1 %3735, %v1577_v19   ;;  %v4247_v27 = vpop.trf.xlu0  ;;  %1814 = vperm.xlu0 %3736, %v1576_v47  }
  0x92   : > { %3447 = vmatmul.mubr.msk.bf16.gmra.mxu0 %vm445_vm1, %v3752_v10  ;;  %v3762_v10 = vld [vmem:[%s4873_s3 + $0xc0] sm:$0xff]  }
  0x93   : > { %2370 = vmatprep.mubr.bf16.mxu0 %v3879_v0 }
  0x94   : > { %v1600_v51 = vpop.permute.xlu1 %1599 }
  0x95   : > { %1829 = vperm.xlu1 %3735, %v1579_v22   ;;  %v4269_v33 = vpop.trf.xlu0  ;;  %1824 = vperm.xlu0 %3736, %v1578_v49  }
  0x96   : > { %3305 = vmatmul.mubr.msk.bf16.gmra.mxu1 %vm445_vm1, %v4203_v15 }
  0x97   : > { %579 = vmatprep.mubr.bf16.mxu1 %v3879_v0 }
  0x98   : > { %v1605_v55 = vpop.permute.xlu1 %1604 }
  0x99   : > { %1839 = vperm.xlu1 %3735, %v1581_v25   ;;  %v4291_v39 = vpop.trf.xlu0  ;;  %1834 = vperm.xlu0 %3736, %v1580_v52   ;;  %v3763_v25 = vld [vmem:[%s4873_s3 + $0xc8] sm:$0xff]  }
  0x9a   : > { %3448 = vmatmul.mubr.msk.bf16.gmra.mxu0 %vm445_vm1, %v3753_v18 }
  0x9b   : > { %2380 = vmatprep.mubr.bf16.mxu0 %v3879_v0 }
  0x9c   : > { %v1610_v59 = vpop.permute.xlu1 %1609 }
  0x9d   : > { %1849 = vperm.xlu1 %3735, %v1583_v28   ;;  %v4313_v45 = vpop.trf.xlu0  ;;  %1844 = vperm.xlu0 %3736, %v1582_v54  }
  0x9e   : > { %3306 = vmatmul.mubr.msk.bf16.gmra.mxu1 %vm445_vm1, %v4225_v21 }
  0x9f   : > { %589 = vmatprep.mubr.bf16.mxu1 %v3879_v0 }
  0xa0   : > { %v1615_v3 = vpop.permute.xlu1 %1614 }
  0xa1   : > { %1859 = vperm.xlu1 %3735, %v1585_v31   ;;  %v4332_v50 = vpop.trf.xlu0  ;;  %1854 = vperm.xlu0 %3736, %v1584_v57  }
  0xa2   : > { %3449 = vmatmul.mubr.msk.bf16.gmra.mxu0 %vm445_vm1, %v3754_v24 }
  0xa3   : > { %2390 = vmatprep.mubr.bf16.mxu0 %v3879_v0 }
  0xa4   : > { %v4383_v8 = vpop.permute.xlu1 %1619 }
  0xa5   : > { %1869 = vperm.xlu1 %3735, %v1587_v34   ;;  %v4348_v56 = vpop.trf.xlu0  ;;  %1864 = vperm.xlu0 %3736, %v1586_v60  }
  0xa6   : > { %3307 = vmatmul.mubr.msk.bf16.gmra.mxu1 %vm445_vm1, %v4247_v27 }
  0xa7   : > { %599 = vmatprep.mubr.bf16.mxu1 %v3879_v0 }
  0xa8   : > { %v4401_v16 = vpop.permute.xlu1 %1624 }
  0xa9   : > { %1879 = vperm.xlu1 %3735, %v1589_v37   ;;  %v4364_v62 = vpop.trf.xlu0  ;;  %1874 = vperm.xlu0 %3736, %v1588_v63  }
  0xaa   : > { %3450 = vmatmul.mubr.msk.bf16.gmra.mxu0 %vm445_vm1, %v3755_v30 }
  0xab   : > { %2400 = vmatprep.mubr.bf16.mxu0 %v3879_v0 }
  0xac   : > { %v1630_v30 = vpop.permute.xlu1 %1629 }
  0xad   : > { %1889 = vperm.xlu1 %3735, %v1591_v40   ;;  %1884 = vperm.xlu0 %3736, %v1590_v4   ;;  %v4380_v5 = vpop.trf.xlu0 }
  0xae   : > { %3308 = vmatmul.mubr.msk.bf16.gmra.mxu1 %vm445_vm1, %v4269_v33 }
  0xaf   : > { %609 = vmatprep.mubr.bf16.mxu1 %v3879_v0 }
  0xb0   : > { %v1635_v47 = vpop.permute.xlu1 %1634 }
  0xb1   : > { %1899 = vperm.xlu1 %3735, %v1593_v43   ;;  %1894 = vperm.xlu0 %3736, %v1592_v9   ;;  %v4403_v17 = vpop.trf.xlu0 }
  0xb2   : > { %3451 = vmatmul.mubr.msk.bf16.gmra.mxu0 %vm445_vm1, %v3756_v36 }
  0xb3   : > { %2410 = vmatprep.mubr.bf16.mxu0 %v3879_v0 }
  0xb4   : > { %v1640_v63 = vpop.permute.xlu1 %1639 }
  0xb5   : > { %1909 = vperm.xlu1 %3735, %v1595_v46   ;;  %1904 = vperm.xlu0 %3736, %v1594_v13   ;;  %v4417_v36 = vpop.trf.xlu0  ;;  %v3764_v46 = vld [vmem:[%s4873_s3 + $0xd0] sm:$0xff]  }
  0xb6   : > { %3309 = vmatmul.mubr.msk.bf16.gmra.mxu1 %vm445_vm1, %v4291_v39 }
  0xb7   : > { %619 = vmatprep.mubr.bf16.mxu1 %v3879_v0 }
  0xb9   : > { %1914 = vperm.xlu0 %3736, %v1596_v23   ;;  %v4433_v57 = vpop.trf.xlu0  ;;  %v1650_v23 = vpop.permute.xlu1 %1649 }
  0xba   : > { %3452 = vmatmul.mubr.msk.bf16.gmra.mxu0 %vm445_vm1, %v3757_v42 }
  0xbb   : > { %2420 = vmatprep.mubr.bf16.mxu0 %v3879_v0 }
  0xbe   : > { %3310 = vmatmul.mubr.msk.bf16.gmra.mxu1 %vm445_vm1, %v4313_v45 }
  0xbf   : > { %629 = vmatprep.mubr.bf16.mxu1 %v3879_v0 }
  0xc2   : > { %3453 = vmatmul.mubr.msk.bf16.gmra.mxu0 %vm445_vm1, %v3758_v48 }
  0xc3   : > { %2430 = vmatprep.mubr.bf16.mxu0 %v3879_v0 }
  0xc6   : > { %3311 = vmatmul.mubr.msk.bf16.gmra.mxu1 %vm445_vm1, %v4332_v50 }
  0xc7   : > { %639 = vmatprep.mubr.bf16.mxu1 %v3879_v0 }
  0xca   : > { %3454 = vmatmul.mubr.msk.bf16.gmra.mxu0 %vm445_vm1, %v3759_v53 }
  0xcb   : > { %2440 = vmatprep.mubr.bf16.mxu0 %v3879_v0 }
  0xce   : > { %3312 = vmatmul.mubr.msk.bf16.gmra.mxu1 %vm445_vm1, %v4348_v56 }
  0xcf   : > { %649 = vmatprep.mubr.bf16.mxu1 %v3879_v0 }
  0xd2   : > { %3455 = vmatmul.mubr.msk.bf16.gmra.mxu0 %vm445_vm1, %v3760_v58 }
  0xd3   : > { %2450 = vmatprep.mubr.bf16.mxu0 %v3879_v0 }
  0xd6   : > { %3313 = vmatmul.mubr.msk.bf16.gmra.mxu1 %vm445_vm1, %v4364_v62 }
  0xd7   : > { %659 = vmatprep.mubr.bf16.mxu1 %v3879_v0 }
  0xda   : > { %3456 = vmatmul.mubr.msk.bf16.gmra.mxu0 %vm445_vm1, %v3761_v1 }
  0xdb   : > { %2460 = vmatprep.mubr.bf16.mxu0 %v3879_v0 }
  0xde   : > { %3314 = vmatmul.mubr.msk.bf16.gmra.mxu1 %vm445_vm1, %v4380_v5 }
  0xdf   : > { %669 = vmatprep.mubr.bf16.mxu1 %v3879_v0 }
  0xe2   : > { %v2222_v14 = vpop.f32.mrf.mxu0  ;;  %3457 = vmatmul.mubr.msk.bf16.gmra.mxu0 %vm445_vm1, %v3762_v10  ;;  %v3765_v10 = vld [vmem:[%s4873_s3 + $0xd8] sm:$0xff]  }
  0xe3   : > { %2470 = vmatprep.mubr.bf16.mxu0 %v3879_v0  ;;  %v2223_v18 = vadd.f32 %v2222_v14, %v1600_v51 }
  0xe4   : > { %v2224_v19 = vpop.f32.mrf.mxu0 }
  0xe5   : > { %v2225_v20 = vadd.f32 %v2224_v19, %v1600_v51  ;;  %v2541_v22 = vmax.f32 %v2223_v18, 0.0 }
  0xe6   : > { %v2226_v24 = vpop.f32.mrf.mxu0  ;;  %3315 = vmatmul.mubr.msk.bf16.gmra.mxu1 %vm445_vm1, %v4403_v17 }
  0xe7   : > { %679 = vmatprep.mubr.bf16.mxu1 %v3879_v0  ;;  %v2542_v26 = vmax.f32 %v2225_v20, 0.0  ;;  %v2227_v28 = vadd.f32 %v2226_v24, %v1605_v55 }
  0xe8   : > { %v2228_v29 = vpop.f32.mrf.mxu0 }
  0xe9   : > { %v3603_v31 = vpack.c.bf16 %v2542_v26, %v2541_v22  ;;  %v2229_v32 = vadd.f32 %v2228_v29, %v1605_v55  ;;  %v2543_v34 = vmax.f32 %v2227_v28, 0.0 }
  0xea   : > { %v2232_v35 = vpop.f32.mrf.mxu0  ;;  %3458 = vmatmul.mubr.msk.bf16.gmra.mxu0 %vm445_vm1, %v3763_v25 }
  0xeb   : > { %2480 = vmatprep.mubr.bf16.mxu0 %v3879_v0  ;;  %3053 = vst [vmem:[%s4422_s12] sm:$0xff] %v3603_v31  ;;  %v2544_v37 = vmax.f32 %v2229_v32, 0.0  ;;  %v2233_v38 = vadd.f32 %v2232_v35, %v1610_v59 }
  0xec   : > { %v2234_v40 = vpop.f32.mrf.mxu0 }
  0xed   : > { %v3604_v41 = vpack.c.bf16 %v2544_v37, %v2543_v34  ;;  %v2235_v42 = vadd.f32 %v2234_v40, %v1610_v59  ;;  %v2545_v43 = vmax.f32 %v2233_v38, 0.0  ;;  %v1655_v38 = vpop.permute.xlu1 %1654 }
  0xee   : > { %v2236_v44 = vpop.f32.mrf.mxu0  ;;  %3316 = vmatmul.mubr.msk.bf16.gmra.mxu1 %vm445_vm1, %v4417_v36 }
  0xef   : > { %689 = vmatprep.mubr.bf16.mxu1 %v3879_v0  ;;  %3054 = vst [vmem:[%s4422_s12 + $0x8] sm:$0xff] %v3604_v41  ;;  %v2546_v48 = vmax.f32 %v2235_v42, 0.0  ;;  %v2237_v49 = vadd.f32 %v2236_v44, %v1615_v3 }
  0xf0   : > { %v2238_v51 = vpop.f32.mrf.mxu0 }
  0xf1   : > { %v3605_v52 = vpack.c.bf16 %v2546_v48, %v2545_v43  ;;  %v2239_v53 = vadd.f32 %v2238_v51, %v1615_v3  ;;  %v2547_v54 = vmax.f32 %v2237_v49, 0.0 }
  0xf2   : > { %v2242_v55 = vpop.f32.mrf.mxu0  ;;  %3459 = vmatmul.mubr.msk.bf16.gmra.mxu0 %vm445_vm1, %v3764_v46  ;;  %v1645_v46 = vpop.permute.xlu0 %1644 }
  0xf3   : > { %2490 = vmatprep.mubr.bf16.mxu0 %v3879_v0  ;;  %3055 = vst [vmem:[%s4422_s12 + $0x10] sm:$0xff] %v3605_v52  ;;  %v2548_v58 = vmax.f32 %v2239_v53, 0.0  ;;  %v2243_v59 = vadd.f32 %v2242_v55, %v4383_v8  ;;  %v1660_v53 = vpop.permute.xlu1 %1659 }
  0xf4   : > { %v2244_v60 = vpop.f32.mrf.mxu0 }
  0xf5   : > { %v3606_v1 = vpack.c.bf16 %v2548_v58, %v2547_v54  ;;  %v2245_v4 = vadd.f32 %v2244_v60, %v4383_v8  ;;  %v2549_v9 = vmax.f32 %v2243_v59, 0.0 }
  0xf6   : > { %v2246_v3 = vpop.f32.mrf.mxu0  ;;  %3317 = vmatmul.mubr.msk.bf16.gmra.mxu1 %vm445_vm1, %v4433_v57 }
  0xf7   : > { %732 = vmatprep.mubr.bf16.mxu1 %v3879_v0  ;;  %3056 = vst [vmem:[%s4422_s12 + $0x18] sm:$0xff] %v3606_v1  ;;  %v2550_v13 = vmax.f32 %v2245_v4, 0.0  ;;  %v2247_v14 = vadd.f32 %v2246_v3, %v4401_v16  ;;  %v1665_v3 = vpop.permute.xlu1 %1664 }
  0xf8   : > { %v2248_v18 = vpop.f32.mrf.mxu0 }
  0xf9   : > { %v3607_v19 = vpack.c.bf16 %v2550_v13, %v2549_v9  ;;  %v2249_v8 = vadd.f32 %v2248_v18, %v4401_v16  ;;  %v2551_v20 = vmax.f32 %v2247_v14, 0.0  ;;  %v3766_v16 = vld [vmem:[%s4873_s3 + $0xe0] sm:$0xff]  }
  0xfa   : > { %v2252_v22 = vpop.f32.mrf.mxu0  ;;  %3460 = vmatmul.mubr.msk.bf16.gmra.mxu0 %vm445_vm1, %v3765_v10 }
  0xfb   : > { %2500 = vmatprep.mubr.bf16.mxu0 %v3879_v0  ;;  %3057 = vst [vmem:[%s4422_s12 + $0x20] sm:$0xff] %v3607_v19  ;;  %v2552_v24 = vmax.f32 %v2249_v8, 0.0  ;;  %v2253_v25 = vadd.f32 %v2252_v22, %v1630_v30  ;;  %v3768_v19 = vld [vmem:[%s4873_s3 + $0xf0] sm:$0xff]  }
  0xfc   : > { %v2254_v26 = vpop.f32.mrf.mxu0 }
  0xfd   : > { %v3608_v28 = vpack.c.bf16 %v2552_v24, %v2551_v20  ;;  %v2255_v29 = vadd.f32 %v2254_v26, %v1630_v30  ;;  %v2553_v31 = vmax.f32 %v2253_v25, 0.0 }
  0xfe   : > { %v2256_v32 = vpop.f32.mrf.mxu0  ;;  %3319 = vmatmul.mubr.msk.bf16.vlgmr.msra.gmra.mxu1 %vm445_vm1, %v4149_v61 }
  0xff   : > { %742 = vmatprep.mubr.bf16.mxu1 %v3879_v0  ;;  %3058 = vst [vmem:[%s4422_s12 + $0x28] sm:$0xff] %v3608_v28  ;;  %v2554_v34 = vmax.f32 %v2255_v29, 0.0  ;;  %v2257_v35 = vadd.f32 %v2256_v32, %v1635_v47  ;;  %v1670_v28 = vpop.permute.xlu1 %1669 }
 0x100   : > { %v2258_v37 = vpop.f32.mrf.mxu0 }
 0x101   : > { %v3609_v40 = vpack.c.bf16 %v2554_v34, %v2553_v31  ;;  %v2259_v41 = vadd.f32 %v2258_v37, %v1635_v47  ;;  %v2555_v30 = vmax.f32 %v2257_v35, 0.0  ;;  %v3767_v47 = vld [vmem:[%s4873_s3 + $0xe8] sm:$0xff]   ;;  %v3769_v37 = vld [vmem:[%s4873_s3 + $0xf8] sm:$0xff]  }
 0x102   : > { %v2262_v42 = vpop.f32.mrf.mxu0  ;;  %3461 = vmatmul.mubr.msk.bf16.gmra.mxu0 %vm445_vm1, %v3766_v16 }
 0x103   : > { %2510 = vmatprep.mubr.bf16.mxu0 %v3879_v0  ;;  %3059 = vst [vmem:[%s4422_s12 + $0x30] sm:$0xff] %v3609_v40  ;;  %v2556_v61 = vmax.f32 %v2259_v41, 0.0  ;;  %v2263_v43 = vadd.f32 %v2262_v42, %v1640_v63 }
 0x104   : > { %v2264_v44 = vpop.f32.mrf.mxu0 }
 0x105   : > { %v3610_v48 = vpack.c.bf16 %v2556_v61, %v2555_v30  ;;  %v2265_v49 = vadd.f32 %v2264_v44, %v1640_v63  ;;  %v2557_v51 = vmax.f32 %v2263_v43, 0.0  ;;  %v1675_v30 = vpop.permute.xlu1 %1674 }
 0x106   : > { %v2266_v52 = vpop.f32.mrf.mxu0  ;;  %3320 = vmatmul.mubr.msk.bf16.gmra.mxu1 %vm445_vm1, %v4165_v2 }
 0x107   : > { %752 = vmatprep.mubr.bf16.mxu1 %v3879_v0  ;;  %3060 = vst [vmem:[%s4422_s12 + $0x38] sm:$0xff] %v3610_v48  ;;  %v2558_v54 = vmax.f32 %v2265_v49, 0.0  ;;  %v2267_v55 = vadd.f32 %v2266_v52, %v1645_v46 }
 0x108   : > { %v2268_v58 = vpop.f32.mrf.mxu0 }
 0x109   : > { %v3611_v59 = vpack.c.bf16 %v2558_v54, %v2557_v51  ;;  %v2269_v60 = vadd.f32 %v2268_v58, %v1645_v46  ;;  %v2559_v63 = vmax.f32 %v2267_v55, 0.0 }
 0x10a   : > { %v2272_v1 = vpop.f32.mrf.mxu0  ;;  %3462 = vmatmul.mubr.msk.bf16.gmra.mxu0 %vm445_vm1, %v3767_v47 }
 0x10b   : > { %2520 = vmatprep.mubr.bf16.mxu0 %v3879_v0  ;;  %3061 = vst [vmem:[%s4422_s12 + $0x40] sm:$0xff] %v3611_v59  ;;  %v2273_v2 = vadd.f32 %v2272_v1, %v1650_v23  ;;  %v2560_v4 = vmax.f32 %v2269_v60, 0.0 }
 0x10c   : > { %v2274_v9 = vpop.f32.mrf.mxu0 }
 0x10d   : > { %v2275_v10 = vadd.f32 %v2274_v9, %v1650_v23  ;;  %v2561_v13 = vmax.f32 %v2273_v2, 0.0  ;;  %v3612_v14 = vpack.c.bf16 %v2560_v4, %v2559_v63 }
 0x10e   : > { %v2276_v18 = vpop.f32.mrf.mxu0  ;;  %3321 = vmatmul.mubr.msk.bf16.gmra.mxu1 %vm445_vm1, %v4181_v7 }
 0x10f   : > { %762 = vmatprep.mubr.bf16.mxu1 %v3879_v0  ;;  %v2562_v8 = vmax.f32 %v2275_v10, 0.0  ;;  %v2277_v20 = vadd.f32 %v2276_v18, %v1655_v38  ;;  %3062 = vst [vmem:[%s4422_s12 + $0x48] sm:$0xff] %v3612_v14 }
 0x110   : > { %v2278_v22 = vpop.f32.mrf.mxu0 }
 0x111   : > { %v3613_v24 = vpack.c.bf16 %v2562_v8, %v2561_v13  ;;  %v2279_v25 = vadd.f32 %v2278_v22, %v1655_v38  ;;  %v2563_v23 = vmax.f32 %v2277_v20, 0.0 }
 0x112   : > { %v2282_v26 = vpop.f32.mrf.mxu0  ;;  %3463 = vmatmul.mubr.msk.bf16.gmra.mxu0 %vm445_vm1, %v3768_v19 }
 0x113   : > { %2530 = vmatprep.mubr.bf16.mxu0 %v3879_v0  ;;  %3063 = vst [vmem:[%s4422_s12 + $0x50] sm:$0xff] %v3613_v24  ;;  %v2564_v7 = vmax.f32 %v2279_v25, 0.0  ;;  %v2283_v29 = vadd.f32 %v2282_v26, %v1660_v53 }
 0x114   : > { %v2284_v31 = vpop.f32.mrf.mxu0 }
 0x115   : > { %v3614_v32 = vpack.c.bf16 %v2564_v7, %v2563_v23  ;;  %v2285_v16 = vadd.f32 %v2284_v31, %v1660_v53  ;;  %v2565_v34 = vmax.f32 %v2283_v29, 0.0  ;;  %v1680_v53 = vpop.permute.xlu1 %1679  ;;  %v1695_v29 = vpop.permute.xlu0 %1694 }
 0x116   : > { %v2286_v35 = vpop.f32.mrf.mxu0  ;;  %3322 = vmatmul.mubr.msk.bf16.gmra.mxu1 %vm445_vm1, %v4203_v15 }
 0x117   : > { %772 = vmatprep.mubr.bf16.mxu1 %v3879_v0  ;;  %3064 = vst [vmem:[%s4422_s12 + $0x58] sm:$0xff] %v3614_v32  ;;  %v2566_v38 = vmax.f32 %v2285_v16, 0.0  ;;  %v2287_v40 = vadd.f32 %v2286_v35, %v1665_v3 }
 0x118   : > { %v2288_v41 = vpop.f32.mrf.mxu0 }
 0x119   : > { %v3615_v42 = vpack.c.bf16 %v2566_v38, %v2565_v34  ;;  %v2289_v61 = vadd.f32 %v2288_v41, %v1665_v3  ;;  %v2567_v43 = vmax.f32 %v2287_v40, 0.0  ;;  %v1685_v3 = vpop.permute.xlu1 %1684 }
 0x11a   : > { %v2292_v44 = vpop.f32.mrf.mxu0  ;;  %3464 = vmatmul.mubr.msk.bf16.gmra.mxu0 %vm445_vm1, %v3769_v37 }
 0x11b   : > { %3065 = vst [vmem:[%s4422_s12 + $0x60] sm:$0xff] %v3615_v42  ;;  %v2568_v15 = vmax.f32 %v2289_v61, 0.0  ;;  %v2293_v46 = vadd.f32 %v2292_v44, %v1670_v28 }
 0x11c   : > { %v2294_v48 = vpop.f32.mrf.mxu0 }
 0x11d   : > { %v3616_v49 = vpack.c.bf16 %v2568_v15, %v2567_v43  ;;  %v2295_v51 = vadd.f32 %v2294_v48, %v1670_v28  ;;  %v2569_v52 = vmax.f32 %v2293_v46, 0.0  ;;  %v1690_v23 = vpop.permute.xlu1 %1689 }
 0x11e   : > { %v2296_v47 = vpop.f32.mrf.mxu0  ;;  %3323 = vmatmul.mubr.msk.bf16.gmra.mxu1 %vm445_vm1, %v4225_v21 }
 0x11f   : > { %782 = vmatprep.mubr.bf16.mxu1 %v3879_v0  ;;  %3066 = vst [vmem:[%s4422_s12 + $0x68] sm:$0xff] %v3616_v49  ;;  %v2570_v54 = vmax.f32 %v2295_v51, 0.0  ;;  %v2297_v55 = vadd.f32 %v2296_v47, %v1675_v30  ;;  %v1705_v49 = vpop.permute.xlu0 %1704  ;;  %v366_v51 = vsub.s32 0, %v3994_v6 }
 0x120   : > { %v2298_v58 = vpop.f32.mrf.mxu0 }
 0x121   : > { %v3617_v59 = vpack.c.bf16 %v2570_v54, %v2569_v52  ;;  %v2299_v60 = vadd.f32 %v2298_v58, %v1675_v30  ;;  %v2571_v63 = vmax.f32 %v2297_v55, 0.0  ;;  %v1700_v42 = vpop.permute.xlu1 %1699  ;;  %v370_v54 = vsub.s32 1, %v3994_v6 }
 0x122   : > { %v2302_v1 = vpop.f32.mrf.mxu0 }
 0x123   : > { %3067 = vst [vmem:[%s4422_s12 + $0x70] sm:$0xff] %v3617_v59  ;;  %v2572_v2 = vmax.f32 %v2299_v60, 0.0  ;;  %v2303_v4 = vadd.f32 %v2302_v1, %v1680_v53 }
 0x124   : > { %v2304_v9 = vpop.f32.mrf.mxu0 }
 0x125   : > { %v3618_v10 = vpack.c.bf16 %v2572_v2, %v2571_v63  ;;  %v2305_v21 = vadd.f32 %v2304_v9, %v1680_v53  ;;  %v2573_v13 = vmax.f32 %v2303_v4, 0.0  ;;  %v1710_v63 = vpop.permute.xlu1 %1709 }
 0x126   : > { %v2306_v14 = vpop.f32.mrf.mxu0  ;;  %3324 = vmatmul.mubr.msk.bf16.gmra.mxu1 %vm445_vm1, %v4247_v27 }
 0x127   : > { %792 = vmatprep.mubr.bf16.mxu1 %v3879_v0  ;;  %3068 = vst [vmem:[%s4422_s12 + $0x78] sm:$0xff] %v3618_v10  ;;  %v2574_v18 = vmax.f32 %v2305_v21, 0.0  ;;  %v2307_v19 = vadd.f32 %v2306_v14, %v1685_v3 }
 0x128   : > { %v2308_v8 = vpop.f32.mrf.mxu0 }
 0x129   : > { %v3619_v20 = vpack.c.bf16 %v2574_v18, %v2573_v13  ;;  %v2309_v22 = vadd.f32 %v2308_v8, %v1685_v3  ;;  %v2575_v24 = vmax.f32 %v2307_v19, 0.0  ;;  %v1715_v13 = vpop.permute.xlu0 %1714 }
 0x12a   : > { %v2312_v25 = vpop.f32.mrf.mxu0 }
 0x12b   : > { %3069 = vst [vmem:[%s4422_s12 + $0x80] sm:$0xff] %v3619_v20  ;;  %v2576_v26 = vmax.f32 %v2309_v22, 0.0  ;;  %v2313_v28 = vadd.f32 %v2312_v25, %v1690_v23 }
 0x12c   : > { %v2314_v7 = vpop.f32.mrf.mxu0 }
 0x12d   : > { %v3620_v31 = vpack.c.bf16 %v2576_v26, %v2575_v24  ;;  %v2315_v27 = vadd.f32 %v2314_v7, %v1690_v23  ;;  %v2577_v32 = vmax.f32 %v2313_v28, 0.0  ;;  %v1720_v26 = vpop.permute.xlu1 %1719 }
 0x12e   : > { %v2316_v16 = vpop.f32.mrf.mxu0  ;;  %3325 = vmatmul.mubr.msk.bf16.gmra.mxu1 %vm445_vm1, %v4269_v33 }
 0x12f   : > { %802 = vmatprep.mubr.bf16.mxu1 %v3879_v0  ;;  %3070 = vst [vmem:[%s4422_s12 + $0x88] sm:$0xff] %v3620_v31  ;;  %v2578_v34 = vmax.f32 %v2315_v27, 0.0  ;;  %v2317_v35 = vadd.f32 %v2316_v16, %v1695_v29 }
 0x130   : > { %v2318_v37 = vpop.f32.mrf.mxu0 }
 0x131   : > { %v3621_v38 = vpack.c.bf16 %v2578_v34, %v2577_v32  ;;  %v2319_v40 = vadd.f32 %v2318_v37, %v1695_v29  ;;  %v2579_v41 = vmax.f32 %v2317_v35, 0.0 }
 0x132   : > { %v2322_v30 = vpop.f32.mrf.mxu0 }
 0x133   : > { %3071 = vst [vmem:[%s4422_s12 + $0x90] sm:$0xff] %v3621_v38  ;;  %v2323_v61 = vadd.f32 %v2322_v30, %v1700_v42  ;;  %v2580_v43 = vmax.f32 %v2319_v40, 0.0  ;;  %v1725_v30 = vpop.permute.xlu0 %1724 }
 0x134   : > { %v2324_v44 = vpop.f32.mrf.mxu0 }
 0x135   : > { %v2325_v15 = vadd.f32 %v2324_v44, %v1700_v42  ;;  %v2581_v46 = vmax.f32 %v2323_v61, 0.0  ;;  %v3622_v48 = vpack.c.bf16 %v2580_v43, %v2579_v41 }
 0x136   : > { %v2326_v33 = vpop.f32.mrf.mxu0  ;;  %3326 = vmatmul.mubr.msk.bf16.gmra.mxu1 %vm445_vm1, %v4291_v39  ;;  %v3770_v39 = vld [vmem:[%s4874_s4] sm:$0xf] }
 0x137   : > { %812 = vmatprep.mubr.bf16.mxu1 %v3879_v0  ;;  %v2582_v52 = vmax.f32 %v2325_v15, 0.0  ;;  %3072 = vst [vmem:[%s4422_s12 + $0x98] sm:$0xff] %v3622_v48  ;;  %v2327_v47 = vadd.f32 %v2326_v33, %v1705_v49  ;;  %v4514_v1 = vrot.slane %v3770_v39, %v366_v51  ;;  %v4517_v3 = vrot.slane %v3770_v39, %v370_v54  ;;  %v1730_v54 = vpop.permute.xlu1 %1729 }
 0x138   : > { %v2328_v53 = vpop.f32.mrf.mxu0 }
 0x139   : > { %v3623_v55 = vpack.c.bf16 %v2582_v52, %v2581_v46  ;;  %v2329_v58 = vadd.f32 %v2328_v53, %v1705_v49  ;;  %v2583_v59 = vmax.f32 %v2327_v47, 0.0 }
 0x13a   : > { %v2332_v60 = vpop.f32.mrf.mxu0 }
 0x13b   : > { %3073 = vst [vmem:[%s4422_s12 + $0xa0] sm:$0xff] %v3623_v55  ;;  %v2333_v2 = vadd.f32 %v2332_v60, %v1710_v63  ;;  %v2584_v4 = vmax.f32 %v2329_v58, 0.0 }
 0x13c   : > { %v2334_v9 = vpop.f32.mrf.mxu0 }
 0x13d   : > { %v2335_v10 = vadd.f32 %v2334_v9, %v1710_v63  ;;  %v2585_v6 = vmax.f32 %v2333_v2, 0.0  ;;  %v3624_v21 = vpack.c.bf16 %v2584_v4, %v2583_v59 }
 0x13e   : > { %v2336_v14 = vpop.f32.mrf.mxu0  ;;  %v541_v18 = vpop.f32.mrf.mxu1  ;;  %3327 = vmatmul.mubr.msk.bf16.gmra.mxu1 %vm445_vm1, %v4313_v45 }
 0x13f   : > { %v542_v19 = vadd.f32 %v541_v18, %v4514_v1  ;;  %822 = vmatprep.mubr.bf16.mxu1 %v3879_v0  ;;  %v2586_v8 = vmax.f32 %v2335_v10, 0.0  ;;  %3074 = vst [vmem:[%s4422_s12 + $0xa8] sm:$0xff] %v3624_v21  ;;  %v2337_v20 = vadd.f32 %v2336_v14, %v1715_v13  ;;  %v1735_v18 = vpop.permute.xlu0 %1734 }
 0x140   : > { %v2338_v22 = vpop.f32.mrf.mxu0  ;;  %v543_v24 = vpop.f32.mrf.mxu1 }
 0x141   : > { %v544_v25 = vadd.f32 %v543_v24, %v4517_v3  ;;  %v3625_v23 = vpack.c.bf16 %v2586_v8, %v2585_v6  ;;  %v2339_v28 = vadd.f32 %v2338_v22, %v1715_v13  ;;  %v893_v7 = vmax.f32 %v542_v19, 0.0 }
 0x142   : > { %v2342_v29 = vpop.f32.mrf.mxu0  ;;  %v545_v31 = vpop.f32.mrf.mxu1  ;;  %v2587_v27 = vmax.f32 %v2337_v20, 0.0 }
 0x143   : > { %v894_v45 = vmax.f32 %v544_v25, 0.0  ;;  %v546_v32 = vadd.f32 %v545_v31, %v4514_v1  ;;  %3075 = vst [vmem:[%s4422_s12 + $0xb0] sm:$0xff] %v3625_v23  ;;  %v2343_v16 = vadd.f32 %v2342_v29, %v1720_v26  ;;  %v2588_v34 = vmax.f32 %v2339_v28, 0.0 }
 0x144   : > { %v2344_v35 = vpop.f32.mrf.mxu0  ;;  %v547_v37 = vpop.f32.mrf.mxu1 }
 0x145   : > { %v3539_v38 = vpack.c.bf16 %v894_v45, %v893_v7  ;;  %v548_v40 = vadd.f32 %v547_v37, %v4517_v3  ;;  %v2345_v41 = vadd.f32 %v2344_v35, %v1720_v26  ;;  %v897_v42 = vmax.f32 %v546_v32, 0.0 }
 0x146   : > { %v2346_v61 = vpop.f32.mrf.mxu0  ;;  %v551_v43 = vpop.f32.mrf.mxu1  ;;  %3328 = vmatmul.mubr.msk.bf16.gmra.mxu1 %vm445_vm1, %v4332_v50  ;;  %v2589_v44 = vmax.f32 %v2343_v16, 0.0  ;;  %v3626_v15 = vpack.c.bf16 %v2588_v34, %v2587_v27 }
 0x147   : > { %1405 = vst [vmem:[%s4532_s19] sm:$0xff] %v3539_v38  ;;  %v898_v46 = vmax.f32 %v548_v40, 0.0  ;;  %v552_v48 = vadd.f32 %v551_v43, %v4514_v1  ;;  %832 = vmatprep.mubr.bf16.mxu1 %v3879_v0  ;;  %v2590_v33 = vmax.f32 %v2345_v41, 0.0  ;;  %v2347_v49 = vadd.f32 %v2346_v61, %v1725_v30 }
 0x148   : > { %v2348_v51 = vpop.f32.mrf.mxu0  ;;  %v553_v52 = vpop.f32.mrf.mxu1  ;;  %3076 = vst [vmem:[%s4422_s12 + $0xb8] sm:$0xff] %v3626_v15 }
 0x149   : > { %v3541_v50 = vpack.c.bf16 %v898_v46, %v897_v42  ;;  %v554_v47 = vadd.f32 %v553_v52, %v4517_v3  ;;  %v3627_v53 = vpack.c.bf16 %v2590_v33, %v2589_v44  ;;  %v2349_v59 = vadd.f32 %v2348_v51, %v1725_v30  ;;  %v1745_v46 = vpop.permute.xlu0 %1744 }
 0x14a   : > { %v2352_v55 = vpop.f32.mrf.mxu0  ;;  %v555_v58 = vpop.f32.mrf.mxu1  ;;  %v2591_v60 = vmax.f32 %v2347_v49, 0.0  ;;  %v901_v63 = vmax.f32 %v552_v48, 0.0 }
 0x14b   : > { %1407 = vst [vmem:[%s4532_s19 + $0x10] sm:$0xff] %v3541_v50  ;;  %v902_v39 = vmax.f32 %v554_v47, 0.0  ;;  %v556_v2 = vadd.f32 %v555_v58, %v4514_v1  ;;  %3077 = vst [vmem:[%s4422_s12 + $0xc0] sm:$0xff] %v3627_v53  ;;  %v2353_v4 = vadd.f32 %v2352_v55, %v1730_v54  ;;  %v2592_v6 = vmax.f32 %v2349_v59, 0.0 }
 0x14c   : > { %v2354_v9 = vpop.f32.mrf.mxu0  ;;  %v557_v10 = vpop.f32.mrf.mxu1 }
 0x14d   : > { %v3543_v21 = vpack.c.bf16 %v902_v39, %v901_v63  ;;  %v558_v13 = vadd.f32 %v557_v10, %v4517_v3  ;;  %v2355_v14 = vadd.f32 %v2354_v9, %v1730_v54  ;;  %v905_v19 = vmax.f32 %v556_v2, 0.0 }
 0x14e   : > { %v2356_v8 = vpop.f32.mrf.mxu0  ;;  %v561_v20 = vpop.f32.mrf.mxu1  ;;  %3329 = vmatmul.mubr.msk.bf16.gmra.mxu1 %vm445_vm1, %v4348_v56  ;;  %v2593_v22 = vmax.f32 %v2353_v4, 0.0  ;;  %v3628_v24 = vpack.c.bf16 %v2592_v6, %v2591_v60 }
 0x14f   : > { %1409 = vst [vmem:[%s4532_s19 + $0x20] sm:$0xff] %v3543_v21  ;;  %v906_v25 = vmax.f32 %v558_v13, 0.0  ;;  %v562_v23 = vadd.f32 %v561_v20, %v4514_v1  ;;  %842 = vmatprep.mubr.bf16.mxu1 %v3879_v0  ;;  %v2594_v26 = vmax.f32 %v2355_v14, 0.0  ;;  %v2357_v28 = vadd.f32 %v2356_v8, %v1735_v18  ;;  %v1740_v56 = vpop.permute.xlu1 %1739 }
 0x150   : > { %v2358_v7 = vpop.f32.mrf.mxu0  ;;  %v563_v29 = vpop.f32.mrf.mxu1  ;;  %3078 = vst [vmem:[%s4422_s12 + $0xc8] sm:$0xff] %v3628_v24 }
 0x151   : > { %v3545_v31 = vpack.c.bf16 %v906_v25, %v905_v19  ;;  %v564_v27 = vadd.f32 %v563_v29, %v4517_v3  ;;  %v3629_v45 = vpack.c.bf16 %v2594_v26, %v2593_v22  ;;  %v2359_v34 = vadd.f32 %v2358_v7, %v1735_v18  ;;  %v1755_v24 = vpop.permute.xlu0 %1754 }
 0x152   : > { %v2362_v32 = vpop.f32.mrf.mxu0  ;;  %v565_v16 = vpop.f32.mrf.mxu1  ;;  %v2595_v35 = vmax.f32 %v2357_v28, 0.0  ;;  %v909_v37 = vmax.f32 %v562_v23, 0.0 }
 0x153   : > { %1411 = vst [vmem:[%s4532_s19 + $0x30] sm:$0xff] %v3545_v31  ;;  %v910_v38 = vmax.f32 %v564_v27, 0.0  ;;  %v566_v40 = vadd.f32 %v565_v16, %v4514_v1  ;;  %3079 = vst [vmem:[%s4422_s12 + $0xd0] sm:$0xff] %v3629_v45  ;;  %v2363_v41 = vadd.f32 %v2362_v32, %v1740_v56  ;;  %v2596_v61 = vmax.f32 %v2359_v34, 0.0 }
 0x154   : > { %v2364_v30 = vpop.f32.mrf.mxu0  ;;  %v567_v42 = vpop.f32.mrf.mxu1 }
 0x155   : > { %v3547_v43 = vpack.c.bf16 %v910_v38, %v909_v37  ;;  %v568_v44 = vadd.f32 %v567_v42, %v4517_v3  ;;  %v2365_v15 = vadd.f32 %v2364_v30, %v1740_v56  ;;  %v913_v48 = vmax.f32 %v566_v40, 0.0 }
 0x156   : > { %v2366_v33 = vpop.f32.mrf.mxu0  ;;  %v571_v49 = vpop.f32.mrf.mxu1  ;;  %3330 = vmatmul.mubr.msk.bf16.gmra.mxu1 %vm445_vm1, %v4364_v62  ;;  %v2597_v51 = vmax.f32 %v2363_v41, 0.0  ;;  %v3630_v52 = vpack.c.bf16 %v2596_v61, %v2595_v35 }
 0x157   : > { %1413 = vst [vmem:[%s4532_s19 + $0x40] sm:$0xff] %v3547_v43  ;;  %v914_v50 = vmax.f32 %v568_v44, 0.0  ;;  %v572_v47 = vadd.f32 %v571_v49, %v4514_v1  ;;  %v2598_v53 = vmax.f32 %v2365_v15, 0.0  ;;  %852 = vmatprep.mubr.bf16.mxu1 %v3879_v0  ;;  %v2367_v54 = vadd.f32 %v2366_v33, %v1745_v46  ;;  %v1750_v62 = vpop.permute.xlu1 %1749 }
 0x158   : > { %v2368_v55 = vpop.f32.mrf.mxu0  ;;  %v573_v58 = vpop.f32.mrf.mxu1  ;;  %3080 = vst [vmem:[%s4422_s12 + $0xd8] sm:$0xff] %v3630_v52 }
 0x159   : > { %v3549_v59 = vpack.c.bf16 %v914_v50, %v913_v48  ;;  %v574_v60 = vadd.f32 %v573_v58, %v4517_v3  ;;  %v3631_v63 = vpack.c.bf16 %v2598_v53, %v2597_v51  ;;  %v2369_v4 = vadd.f32 %v2368_v55, %v1745_v46  ;;  %v1765_v51 = vpop.permute.xlu0 %1764 }
 0x15a   : > { %v2372_v39 = vpop.f32.mrf.mxu0  ;;  %v575_v2 = vpop.f32.mrf.mxu1  ;;  %v2599_v9 = vmax.f32 %v2367_v54, 0.0  ;;  %v917_v10 = vmax.f32 %v572_v47, 0.0 }
 0x15b   : > { %1415 = vst [vmem:[%s4532_s19 + $0x50] sm:$0xff] %v3549_v59  ;;  %v918_v6 = vmax.f32 %v574_v60, 0.0  ;;  %v576_v21 = vadd.f32 %v575_v2, %v4514_v1  ;;  %3081 = vst [vmem:[%s4422_s12 + $0xe0] sm:$0xff] %v3631_v63  ;;  %v2373_v13 = vadd.f32 %v2372_v39, %v1750_v62  ;;  %v2600_v19 = vmax.f32 %v2369_v4, 0.0 }
 0x15c   : > { %v2374_v14 = vpop.f32.mrf.mxu0  ;;  %v577_v18 = vpop.f32.mrf.mxu1 }
 0x15d   : > { %v3551_v8 = vpack.c.bf16 %v918_v6, %v917_v10  ;;  %v578_v20 = vadd.f32 %v577_v18, %v4517_v3  ;;  %v2375_v22 = vadd.f32 %v2374_v14, %v1750_v62  ;;  %v921_v25 = vmax.f32 %v576_v21, 0.0 }
 0x15e   : > { %v2376_v23 = vpop.f32.mrf.mxu0  ;;  %v581_v26 = vpop.f32.mrf.mxu1  ;;  %3331 = vmatmul.mubr.msk.bf16.gmra.mxu1 %vm445_vm1, %v4380_v5  ;;  %v2601_v28 = vmax.f32 %v2373_v13, 0.0  ;;  %v3632_v7 = vpack.c.bf16 %v2600_v19, %v2599_v9 }
 0x15f   : > { %1417 = vst [vmem:[%s4532_s19 + $0x60] sm:$0xff] %v3551_v8  ;;  %v922_v29 = vmax.f32 %v578_v20, 0.0  ;;  %v582_v31 = vadd.f32 %v581_v26, %v4514_v1  ;;  %v2602_v27 = vmax.f32 %v2375_v22, 0.0  ;;  %862 = vmatprep.mubr.bf16.mxu1 %v3879_v0  ;;  %v2377_v45 = vadd.f32 %v2376_v23, %v1755_v24  ;;  %v1760_v5 = vpop.permute.xlu1 %1759  ;;  %v1775_v26 = vpop.permute.xlu0 %1774 }
 0x160   : > { %v2378_v56 = vpop.f32.mrf.mxu0  ;;  %v583_v32 = vpop.f32.mrf.mxu1  ;;  %3082 = vst [vmem:[%s4422_s12 + $0xe8] sm:$0xff] %v3632_v7 }
 0x161   : > { %v3553_v16 = vpack.c.bf16 %v922_v29, %v921_v25  ;;  %v3633_v34 = vpack.c.bf16 %v2602_v27, %v2601_v28  ;;  %v584_v35 = vadd.f32 %v583_v32, %v4517_v3  ;;  %v2379_v40 = vadd.f32 %v2378_v56, %v1755_v24 }
 0x162   : > { %v2382_v37 = vpop.f32.mrf.mxu0  ;;  %v585_v38 = vpop.f32.mrf.mxu1  ;;  %v2603_v41 = vmax.f32 %v2377_v45, 0.0  ;;  %v925_v30 = vmax.f32 %v582_v31, 0.0 }
 0x163   : > { %1419 = vst [vmem:[%s4532_s19 + $0x70] sm:$0xff] %v3553_v16  ;;  %3083 = vst [vmem:[%s4422_s12 + $0xf0] sm:$0xff] %v3633_v34  ;;  %v926_v42 = vmax.f32 %v584_v35, 0.0  ;;  %v2383_v61 = vadd.f32 %v2382_v37, %v1760_v5  ;;  %v586_v43 = vadd.f32 %v585_v38, %v4514_v1  ;;  %v2604_v46 = vmax.f32 %v2379_v40, 0.0  ;;  %v1770_v2 = vpop.permute.xlu1 %1769 }
 0x164   : > { %v2384_v44 = vpop.f32.mrf.mxu0  ;;  %v587_v15 = vpop.f32.mrf.mxu1 }
 0x165   : > { %v3555_v48 = vpack.c.bf16 %v926_v42, %v925_v30  ;;  %v2385_v33 = vadd.f32 %v2384_v44, %v1760_v5  ;;  %v2605_v49 = vmax.f32 %v2383_v61, 0.0  ;;  %v588_v52 = vadd.f32 %v587_v15, %v4517_v3 }
 0x166   : > { %v2386_v50 = vpop.f32.mrf.mxu0  ;;  %v591_v47 = vpop.f32.mrf.mxu1  ;;  %3332 = vmatmul.mubr.msk.bf16.gmra.mxu1 %vm445_vm1, %v4403_v17  ;;  %v3634_v53 = vpack.c.bf16 %v2604_v46, %v2603_v41  ;;  %v929_v59 = vmax.f32 %v586_v43, 0.0 }
 0x167   : > { %1421 = vst [vmem:[%s4532_s19 + $0x80] sm:$0xff] %v3555_v48  ;;  %v2606_v54 = vmax.f32 %v2385_v33, 0.0  ;;  %v592_v55 = vadd.f32 %v591_v47, %v4514_v1  ;;  %872 = vmatprep.mubr.bf16.mxu1 %v3879_v0  ;;  %v2387_v58 = vadd.f32 %v2386_v50, %v1765_v51  ;;  %v930_v60 = vmax.f32 %v588_v52, 0.0  ;;  %v1780_v37 = vpop.permute.xlu1 %1779  ;;  %v1785_v52 = vpop.permute.xlu0 %1784 }
 0x168   : > { %v2388_v63 = vpop.f32.mrf.mxu0  ;;  %v593_v62 = vpop.f32.mrf.mxu1  ;;  %3084 = vst [vmem:[%s4422_s12 + $0xf8] sm:$0xff] %v3634_v53 }
 0x169   : > { %v3635_v39 = vpack.c.bf16 %v2606_v54, %v2605_v49  ;;  %v594_v4 = vadd.f32 %v593_v62, %v4517_v3  ;;  %v2389_v17 = vadd.f32 %v2388_v63, %v1765_v51  ;;  %v3557_v9 = vpack.c.bf16 %v930_v60, %v929_v59 }
 0x16a   : > { %v2392_v10 = vpop.f32.mrf.mxu0  ;;  %v595_v6 = vpop.f32.mrf.mxu1  ;;  %v2607_v21 = vmax.f32 %v2387_v58, 0.0  ;;  %v933_v13 = vmax.f32 %v592_v55, 0.0 }
 0x16b   : > { %3085 = vst [vmem:[%s4422_s12 + $0x100] sm:$0xff] %v3635_v39  ;;  %v934_v14 = vmax.f32 %v594_v4, 0.0  ;;  %v2393_v18 = vadd.f32 %v2392_v10, %v1770_v2  ;;  %v2608_v19 = vmax.f32 %v2389_v17, 0.0  ;;  %1423 = vst [vmem:[%s4532_s19 + $0x90] sm:$0xff] %v3557_v9  ;;  %v596_v8 = vadd.f32 %v595_v6, %v4514_v1 }
 0x16c   : > { %v2394_v20 = vpop.f32.mrf.mxu0  ;;  %v597_v22 = vpop.f32.mrf.mxu1 }
 0x16d   : > { %v3559_v24 = vpack.c.bf16 %v934_v14, %v933_v13  ;;  %v2609_v25 = vmax.f32 %v2393_v18, 0.0  ;;  %v2395_v23 = vadd.f32 %v2394_v20, %v1770_v2  ;;  %v598_v28 = vadd.f32 %v597_v22, %v4517_v3  ;;  %v1790_v2 = vpop.permute.xlu1 %1789 }
 0x16e   : > { %v2396_v7 = vpop.f32.mrf.mxu0  ;;  %v601_v29 = vpop.f32.mrf.mxu1  ;;  %3333 = vmatmul.mubr.msk.bf16.gmra.mxu1 %vm445_vm1, %v4417_v36  ;;  %v3636_v31 = vpack.c.bf16 %v2608_v19, %v2607_v21  ;;  %v937_v32 = vmax.f32 %v596_v8, 0.0 }
 0x16f   : > { %1425 = vst [vmem:[%s4532_s19 + $0xa0] sm:$0xff] %v3559_v24  ;;  %v2610_v27 = vmax.f32 %v2395_v23, 0.0  ;;  %v602_v45 = vadd.f32 %v601_v29, %v4514_v1  ;;  %882 = vmatprep.mubr.bf16.mxu1 %v3879_v0  ;;  %v2397_v56 = vadd.f32 %v2396_v7, %v1775_v26  ;;  %v938_v16 = vmax.f32 %v598_v28, 0.0 }
 0x170   : > { %v2398_v34 = vpop.f32.mrf.mxu0  ;;  %v603_v35 = vpop.f32.mrf.mxu1  ;;  %3086 = vst [vmem:[%s4422_s12 + $0x108] sm:$0xff] %v3636_v31 }
 0x171   : > { %v3637_v5 = vpack.c.bf16 %v2610_v27, %v2609_v25  ;;  %v604_v38 = vadd.f32 %v603_v35, %v4517_v3  ;;  %v2399_v36 = vadd.f32 %v2398_v34, %v1775_v26  ;;  %v3561_v40 = vpack.c.bf16 %v938_v16, %v937_v32  ;;  %v1795_v26 = vpop.permute.xlu0 %1794 }
 0x172   : > { %v2402_v41 = vpop.f32.mrf.mxu0  ;;  %v605_v30 = vpop.f32.mrf.mxu1  ;;  %v2611_v42 = vmax.f32 %v2397_v56, 0.0  ;;  %v941_v61 = vmax.f32 %v602_v45, 0.0 }
 0x173   : > { %3087 = vst [vmem:[%s4422_s12 + $0x110] sm:$0xff] %v3637_v5  ;;  %v942_v43 = vmax.f32 %v604_v38, 0.0  ;;  %v2403_v0 = vadd.f32 %v2402_v41, %v1780_v37  ;;  %v2612_v44 = vmax.f32 %v2399_v36, 0.0  ;;  %1427 = vst [vmem:[%s4532_s19 + $0xb0] sm:$0xff] %v3561_v40  ;;  %v606_v15 = vadd.f32 %v605_v30, %v4514_v1  ;;  %v1800_v5 = vpop.permute.xlu1 %1799 }
 0x174   : > { %v2404_v46 = vpop.f32.mrf.mxu0  ;;  %v607_v48 = vpop.f32.mrf.mxu1 }
 0x175   : > { %v3563_v33 = vpack.c.bf16 %v942_v43, %v941_v61  ;;  %v2613_v49 = vmax.f32 %v2403_v0, 0.0  ;;  %v2405_v51 = vadd.f32 %v2404_v46, %v1780_v37  ;;  %v608_v50 = vadd.f32 %v607_v48, %v4517_v3 }
 0x176   : > { %v2406_v47 = vpop.f32.mrf.mxu0  ;;  %v611_v53 = vpop.f32.mrf.mxu1  ;;  %3334 = vmatmul.mubr.msk.bf16.gmra.mxu1 %vm445_vm1, %v4433_v57  ;;  %v3638_v54 = vpack.c.bf16 %v2612_v44, %v2611_v42  ;;  %v945_v60 = vmax.f32 %v606_v15, 0.0 }
 0x177   : > { %1429 = vst [vmem:[%s4532_s19 + $0xc0] sm:$0xff] %v3563_v33  ;;  %v2614_v55 = vmax.f32 %v2405_v51, 0.0  ;;  %v612_v58 = vadd.f32 %v611_v53, %v4514_v1  ;;  %v2407_v59 = vadd.f32 %v2406_v47, %v1785_v52  ;;  %v946_v63 = vmax.f32 %v608_v50, 0.0 }
 0x178   : > { %v2408_v62 = vpop.f32.mrf.mxu0  ;;  %v613_v39 = vpop.f32.mrf.mxu1  ;;  %3088 = vst [vmem:[%s4422_s12 + $0x118] sm:$0xff] %v3638_v54 }
 0x179   : > { %v3639_v4 = vpack.c.bf16 %v2614_v55, %v2613_v49  ;;  %v614_v17 = vadd.f32 %v613_v39, %v4517_v3  ;;  %v2409_v9 = vadd.f32 %v2408_v62, %v1785_v52  ;;  %v3565_v10 = vpack.c.bf16 %v946_v63, %v945_v60  ;;  %v1805_v52 = vpop.permute.xlu0 %1804 }
 0x17a   : > { %v2412_v57 = vpop.f32.mrf.mxu0  ;;  %v615_v6 = vpop.f32.mrf.mxu1  ;;  %v2615_v21 = vmax.f32 %v2407_v59, 0.0  ;;  %v949_v13 = vmax.f32 %v612_v58, 0.0 }
 0x17b   : > { %3089 = vst [vmem:[%s4422_s12 + $0x120] sm:$0xff] %v3639_v4  ;;  %v950_v14 = vmax.f32 %v614_v17, 0.0  ;;  %v2413_v18 = vadd.f32 %v2412_v57, %v1790_v2  ;;  %v2616_v19 = vmax.f32 %v2409_v9, 0.0  ;;  %1431 = vst [vmem:[%s4532_s19 + $0xd0] sm:$0xff] %v3565_v10  ;;  %v616_v8 = vadd.f32 %v615_v6, %v4514_v1 }
 0x17c   : > { %v2414_v20 = vpop.f32.mrf.mxu0  ;;  %v617_v22 = vpop.f32.mrf.mxu1 }
 0x17d   : > { %v3567_v24 = vpack.c.bf16 %v950_v14, %v949_v13  ;;  %v2617_v25 = vmax.f32 %v2413_v18, 0.0  ;;  %v2415_v23 = vadd.f32 %v2414_v20, %v1790_v2  ;;  %v618_v28 = vadd.f32 %v617_v22, %v4517_v3  ;;  %v1810_v2 = vpop.permute.xlu1 %1809 }
 0x17e   : > { %v2416_v7 = vpop.f32.mrf.mxu0  ;;  %v621_v29 = vpop.f32.mrf.mxu1  ;;  %v3640_v31 = vpack.c.bf16 %v2616_v19, %v2615_v21  ;;  %v953_v32 = vmax.f32 %v616_v8, 0.0 }
 0x17f   : > { %1433 = vst [vmem:[%s4532_s19 + $0xe0] sm:$0xff] %v3567_v24  ;;  %v2618_v27 = vmax.f32 %v2415_v23, 0.0  ;;  %v622_v45 = vadd.f32 %v621_v29, %v4514_v1  ;;  %v2417_v56 = vadd.f32 %v2416_v7, %v1795_v26  ;;  %v954_v16 = vmax.f32 %v618_v28, 0.0 }
 0x180   : > { %v2418_v34 = vpop.f32.mrf.mxu0  ;;  %v623_v35 = vpop.f32.mrf.mxu1  ;;  %3090 = vst [vmem:[%s4422_s12 + $0x128] sm:$0xff] %v3640_v31 }
 0x181   : > { %v3641_v37 = vpack.c.bf16 %v2618_v27, %v2617_v25  ;;  %v624_v38 = vadd.f32 %v623_v35, %v4517_v3  ;;  %v2419_v36 = vadd.f32 %v2418_v34, %v1795_v26  ;;  %v3569_v40 = vpack.c.bf16 %v954_v16, %v953_v32  ;;  %v1815_v26 = vpop.permute.xlu0 %1814 }
 0x182   : > { %v2422_v41 = vpop.f32.mrf.mxu0  ;;  %v625_v30 = vpop.f32.mrf.mxu1  ;;  %v2619_v42 = vmax.f32 %v2417_v56, 0.0  ;;  %v957_v61 = vmax.f32 %v622_v45, 0.0 }
 0x183   : > { %3091 = vst [vmem:[%s4422_s12 + $0x130] sm:$0xff] %v3641_v37  ;;  %v958_v43 = vmax.f32 %v624_v38, 0.0  ;;  %v2423_v0 = vadd.f32 %v2422_v41, %v1800_v5  ;;  %v2620_v44 = vmax.f32 %v2419_v36, 0.0  ;;  %1435 = vst [vmem:[%s4532_s19 + $0xf0] sm:$0xff] %v3569_v40  ;;  %v626_v15 = vadd.f32 %v625_v30, %v4514_v1 }
 0x184   : > { %v2424_v46 = vpop.f32.mrf.mxu0  ;;  %v627_v48 = vpop.f32.mrf.mxu1 }
 0x185   : > { %v3571_v33 = vpack.c.bf16 %v958_v43, %v957_v61  ;;  %v2621_v49 = vmax.f32 %v2423_v0, 0.0  ;;  %v2425_v51 = vadd.f32 %v2424_v46, %v1800_v5  ;;  %v628_v50 = vadd.f32 %v627_v48, %v4517_v3  ;;  %v1820_v5 = vpop.permute.xlu1 %1819 }
 0x186   : > { %v2426_v47 = vpop.f32.mrf.mxu0  ;;  %v631_v53 = vpop.f32.mrf.mxu1  ;;  %v3642_v54 = vpack.c.bf16 %v2620_v44, %v2619_v42  ;;  %v961_v60 = vmax.f32 %v626_v15, 0.0 }
 0x187   : > { %1437 = vst [vmem:[%s4532_s19 + $0x100] sm:$0xff] %v3571_v33  ;;  %v2622_v55 = vmax.f32 %v2425_v51, 0.0  ;;  %v632_v58 = vadd.f32 %v631_v53, %v4514_v1  ;;  %v2427_v59 = vadd.f32 %v2426_v47, %v1805_v52  ;;  %v962_v63 = vmax.f32 %v628_v50, 0.0 }
 0x188   : > { %v2428_v62 = vpop.f32.mrf.mxu0  ;;  %v633_v39 = vpop.f32.mrf.mxu1  ;;  %3092 = vst [vmem:[%s4422_s12 + $0x138] sm:$0xff] %v3642_v54 }
 0x189   : > { %v3643_v4 = vpack.c.bf16 %v2622_v55, %v2621_v49  ;;  %v634_v17 = vadd.f32 %v633_v39, %v4517_v3  ;;  %v2429_v9 = vadd.f32 %v2428_v62, %v1805_v52  ;;  %v3573_v10 = vpack.c.bf16 %v962_v63, %v961_v60  ;;  %v1825_v52 = vpop.permute.xlu0 %1824 }
 0x18a   : > { %v2432_v57 = vpop.f32.mrf.mxu0  ;;  %v635_v6 = vpop.f32.mrf.mxu1  ;;  %v2623_v21 = vmax.f32 %v2427_v59, 0.0  ;;  %v965_v13 = vmax.f32 %v632_v58, 0.0 }
 0x18b   : > { %3093 = vst [vmem:[%s4422_s12 + $0x140] sm:$0xff] %v3643_v4  ;;  %v966_v14 = vmax.f32 %v634_v17, 0.0  ;;  %v2433_v18 = vadd.f32 %v2432_v57, %v1810_v2  ;;  %v2624_v19 = vmax.f32 %v2429_v9, 0.0  ;;  %1439 = vst [vmem:[%s4532_s19 + $0x110] sm:$0xff] %v3573_v10  ;;  %v636_v8 = vadd.f32 %v635_v6, %v4514_v1 }
 0x18c   : > { %v2434_v20 = vpop.f32.mrf.mxu0  ;;  %v637_v22 = vpop.f32.mrf.mxu1 }
 0x18d   : > { %v3575_v24 = vpack.c.bf16 %v966_v14, %v965_v13  ;;  %v2625_v25 = vmax.f32 %v2433_v18, 0.0  ;;  %v2435_v23 = vadd.f32 %v2434_v20, %v1810_v2  ;;  %v638_v28 = vadd.f32 %v637_v22, %v4517_v3  ;;  %v1830_v2 = vpop.permute.xlu1 %1829 }
 0x18e   : > { %v2436_v7 = vpop.f32.mrf.mxu0  ;;  %v641_v29 = vpop.f32.mrf.mxu1  ;;  %v3644_v31 = vpack.c.bf16 %v2624_v19, %v2623_v21  ;;  %v969_v32 = vmax.f32 %v636_v8, 0.0 }
 0x18f   : > { %1441 = vst [vmem:[%s4532_s19 + $0x120] sm:$0xff] %v3575_v24  ;;  %v2626_v27 = vmax.f32 %v2435_v23, 0.0  ;;  %v642_v45 = vadd.f32 %v641_v29, %v4514_v1  ;;  %v2437_v56 = vadd.f32 %v2436_v7, %v1815_v26  ;;  %v970_v16 = vmax.f32 %v638_v28, 0.0 }
 0x190   : > { %v2438_v34 = vpop.f32.mrf.mxu0  ;;  %v643_v35 = vpop.f32.mrf.mxu1  ;;  %3094 = vst [vmem:[%s4422_s12 + $0x148] sm:$0xff] %v3644_v31 }
 0x191   : > { %v3645_v37 = vpack.c.bf16 %v2626_v27, %v2625_v25  ;;  %v644_v38 = vadd.f32 %v643_v35, %v4517_v3  ;;  %v2439_v36 = vadd.f32 %v2438_v34, %v1815_v26  ;;  %v3577_v40 = vpack.c.bf16 %v970_v16, %v969_v32  ;;  %v1835_v26 = vpop.permute.xlu0 %1834 }
 0x192   : > { %v2442_v41 = vpop.f32.mrf.mxu0  ;;  %v645_v30 = vpop.f32.mrf.mxu1  ;;  %v2627_v42 = vmax.f32 %v2437_v56, 0.0  ;;  %v973_v61 = vmax.f32 %v642_v45, 0.0 }
 0x193   : > { %3095 = vst [vmem:[%s4422_s12 + $0x150] sm:$0xff] %v3645_v37  ;;  %v974_v43 = vmax.f32 %v644_v38, 0.0  ;;  %v2443_v0 = vadd.f32 %v2442_v41, %v1820_v5  ;;  %v2628_v44 = vmax.f32 %v2439_v36, 0.0  ;;  %1443 = vst [vmem:[%s4532_s19 + $0x130] sm:$0xff] %v3577_v40  ;;  %v646_v15 = vadd.f32 %v645_v30, %v4514_v1 }
 0x194   : > { %v2444_v46 = vpop.f32.mrf.mxu0  ;;  %v647_v48 = vpop.f32.mrf.mxu1 }
 0x195   : > { %v3579_v33 = vpack.c.bf16 %v974_v43, %v973_v61  ;;  %v2629_v49 = vmax.f32 %v2443_v0, 0.0  ;;  %v2445_v51 = vadd.f32 %v2444_v46, %v1820_v5  ;;  %v648_v50 = vadd.f32 %v647_v48, %v4517_v3  ;;  %v1840_v5 = vpop.permute.xlu1 %1839 }
 0x196   : > { %v2446_v47 = vpop.f32.mrf.mxu0  ;;  %v651_v53 = vpop.f32.mrf.mxu1  ;;  %v3646_v54 = vpack.c.bf16 %v2628_v44, %v2627_v42  ;;  %v977_v60 = vmax.f32 %v646_v15, 0.0 }
 0x197   : > { %1445 = vst [vmem:[%s4532_s19 + $0x140] sm:$0xff] %v3579_v33  ;;  %v2630_v55 = vmax.f32 %v2445_v51, 0.0  ;;  %v652_v58 = vadd.f32 %v651_v53, %v4514_v1  ;;  %v2447_v59 = vadd.f32 %v2446_v47, %v1825_v52  ;;  %v978_v63 = vmax.f32 %v648_v50, 0.0  ;;  %v1845_v51 = vpop.permute.xlu0 %1844 }
 0x198   : > { %v2448_v62 = vpop.f32.mrf.mxu0  ;;  %v653_v39 = vpop.f32.mrf.mxu1  ;;  %3096 = vst [vmem:[%s4422_s12 + $0x158] sm:$0xff] %v3646_v54 }
 0x199   : > { %v3647_v4 = vpack.c.bf16 %v2630_v55, %v2629_v49  ;;  %v654_v17 = vadd.f32 %v653_v39, %v4517_v3  ;;  %v2449_v9 = vadd.f32 %v2448_v62, %v1825_v52  ;;  %v3581_v10 = vpack.c.bf16 %v978_v63, %v977_v60 }
 0x19a   : > { %v2452_v57 = vpop.f32.mrf.mxu0  ;;  %v655_v6 = vpop.f32.mrf.mxu1  ;;  %v2631_v21 = vmax.f32 %v2447_v59, 0.0  ;;  %v981_v13 = vmax.f32 %v652_v58, 0.0 }
 0x19b   : > { %3097 = vst [vmem:[%s4422_s12 + $0x160] sm:$0xff] %v3647_v4  ;;  %v982_v14 = vmax.f32 %v654_v17, 0.0  ;;  %v2453_v18 = vadd.f32 %v2452_v57, %v1830_v2  ;;  %v2632_v19 = vmax.f32 %v2449_v9, 0.0  ;;  %1447 = vst [vmem:[%s4532_s19 + $0x150] sm:$0xff] %v3581_v10  ;;  %v656_v8 = vadd.f32 %v655_v6, %v4514_v1 }
 0x19c   : > { %v2454_v20 = vpop.f32.mrf.mxu0  ;;  %v657_v22 = vpop.f32.mrf.mxu1 }
 0x19d   : > { %v3583_v24 = vpack.c.bf16 %v982_v14, %v981_v13  ;;  %v2633_v25 = vmax.f32 %v2453_v18, 0.0  ;;  %v2455_v23 = vadd.f32 %v2454_v20, %v1830_v2  ;;  %v658_v28 = vadd.f32 %v657_v22, %v4517_v3  ;;  %v1850_v2 = vpop.permute.xlu1 %1849 }
 0x19e   : > { %v2456_v7 = vpop.f32.mrf.mxu0  ;;  %v661_v29 = vpop.f32.mrf.mxu1  ;;  %v3648_v31 = vpack.c.bf16 %v2632_v19, %v2631_v21  ;;  %v985_v32 = vmax.f32 %v656_v8, 0.0 }
 0x19f   : > { %1449 = vst [vmem:[%s4532_s19 + $0x160] sm:$0xff] %v3583_v24  ;;  %v2634_v27 = vmax.f32 %v2455_v23, 0.0  ;;  %v662_v45 = vadd.f32 %v661_v29, %v4514_v1  ;;  %v2457_v56 = vadd.f32 %v2456_v7, %v1835_v26  ;;  %v986_v16 = vmax.f32 %v658_v28, 0.0  ;;  %v1855_v23 = vpop.permute.xlu0 %1854 }
 0x1a0   : > { %v2458_v34 = vpop.f32.mrf.mxu0  ;;  %v663_v35 = vpop.f32.mrf.mxu1  ;;  %3098 = vst [vmem:[%s4422_s12 + $0x168] sm:$0xff] %v3648_v31 }
 0x1a1   : > { %v3649_v37 = vpack.c.bf16 %v2634_v27, %v2633_v25  ;;  %v664_v38 = vadd.f32 %v663_v35, %v4517_v3  ;;  %v2459_v36 = vadd.f32 %v2458_v34, %v1835_v26  ;;  %v3585_v40 = vpack.c.bf16 %v986_v16, %v985_v32 }
 0x1a2   : > { %v2462_v41 = vpop.f32.mrf.mxu0  ;;  %v665_v30 = vpop.f32.mrf.mxu1  ;;  %v2635_v42 = vmax.f32 %v2457_v56, 0.0  ;;  %v989_v61 = vmax.f32 %v662_v45, 0.0 }
 0x1a3   : > { %3099 = vst [vmem:[%s4422_s12 + $0x170] sm:$0xff] %v3649_v37  ;;  %v990_v43 = vmax.f32 %v664_v38, 0.0  ;;  %v2463_v0 = vadd.f32 %v2462_v41, %v1840_v5  ;;  %v2636_v44 = vmax.f32 %v2459_v36, 0.0  ;;  %1451 = vst [vmem:[%s4532_s19 + $0x170] sm:$0xff] %v3585_v40  ;;  %v666_v15 = vadd.f32 %v665_v30, %v4514_v1 }
 0x1a4   : > { %v2464_v46 = vpop.f32.mrf.mxu0  ;;  %v667_v48 = vpop.f32.mrf.mxu1 }
 0x1a5   : > { %v3587_v33 = vpack.c.bf16 %v990_v43, %v989_v61  ;;  %v2465_v49 = vadd.f32 %v2464_v46, %v1840_v5  ;;  %v668_v52 = vadd.f32 %v667_v48, %v4517_v3  ;;  %v3650_v53 = vpack.c.bf16 %v2636_v44, %v2635_v42  ;;  %v1860_v5 = vpop.permute.xlu1 %1859 }
 0x1a6   : > { %v2466_v50 = vpop.f32.mrf.mxu0  ;;  %v671_v47 = vpop.f32.mrf.mxu1  ;;  %v2637_v54 = vmax.f32 %v2463_v0, 0.0  ;;  %v993_v60 = vmax.f32 %v666_v15, 0.0 }
 0x1a7   : > { %1453 = vst [vmem:[%s4532_s19 + $0x180] sm:$0xff] %v3587_v33  ;;  %v2638_v55 = vmax.f32 %v2465_v49, 0.0  ;;  %v672_v58 = vadd.f32 %v671_v47, %v4514_v1  ;;  %v2467_v59 = vadd.f32 %v2466_v50, %v1845_v51  ;;  %v994_v63 = vmax.f32 %v668_v52, 0.0  ;;  %3100 = vst [vmem:[%s4422_s12 + $0x178] sm:$0xff] %v3650_v53 }
 0x1a8   : > { %v2468_v62 = vpop.f32.mrf.mxu0  ;;  %v673_v39 = vpop.f32.mrf.mxu1 }
 0x1a9   : > { %v3651_v4 = vpack.c.bf16 %v2638_v55, %v2637_v54  ;;  %v674_v17 = vadd.f32 %v673_v39, %v4517_v3  ;;  %v2469_v9 = vadd.f32 %v2468_v62, %v1845_v51  ;;  %v3589_v10 = vpack.c.bf16 %v994_v63, %v993_v60  ;;  %v1865_v51 = vpop.permute.xlu0 %1864 }
 0x1aa   : > { %v2472_v57 = vpop.f32.mrf.mxu0  ;;  %v675_v6 = vpop.f32.mrf.mxu1  ;;  %v2639_v21 = vmax.f32 %v2467_v59, 0.0  ;;  %v997_v13 = vmax.f32 %v672_v58, 0.0 }
 0x1ab   : > { %3101 = vst [vmem:[%s4422_s12 + $0x180] sm:$0xff] %v3651_v4  ;;  %v998_v14 = vmax.f32 %v674_v17, 0.0  ;;  %v2473_v18 = vadd.f32 %v2472_v57, %v1850_v2  ;;  %v2640_v19 = vmax.f32 %v2469_v9, 0.0  ;;  %1455 = vst [vmem:[%s4532_s19 + $0x190] sm:$0xff] %v3589_v10  ;;  %v676_v8 = vadd.f32 %v675_v6, %v4514_v1 }
 0x1ac   : > { %v2474_v20 = vpop.f32.mrf.mxu0  ;;  %v677_v22 = vpop.f32.mrf.mxu1 }
 0x1ad   : > { %v3591_v24 = vpack.c.bf16 %v998_v14, %v997_v13  ;;  %v2475_v25 = vadd.f32 %v2474_v20, %v1850_v2  ;;  %v678_v26 = vadd.f32 %v677_v22, %v4517_v3  ;;  %v3652_v29 = vpack.c.bf16 %v2640_v19, %v2639_v21  ;;  %v1870_v2 = vpop.permute.xlu1 %1869 }
 0x1ae   : > { %v2476_v28 = vpop.f32.mrf.mxu0  ;;  %v681_v7 = vpop.f32.mrf.mxu1  ;;  %v2641_v31 = vmax.f32 %v2473_v18, 0.0  ;;  %v1001_v32 = vmax.f32 %v676_v8, 0.0 }
 0x1af   : > { %1457 = vst [vmem:[%s4532_s19 + $0x1a0] sm:$0xff] %v3591_v24  ;;  %v2642_v27 = vmax.f32 %v2475_v25, 0.0  ;;  %v682_v45 = vadd.f32 %v681_v7, %v4514_v1  ;;  %v2477_v56 = vadd.f32 %v2476_v28, %v1855_v23  ;;  %v1002_v16 = vmax.f32 %v678_v26, 0.0  ;;  %3102 = vst [vmem:[%s4422_s12 + $0x188] sm:$0xff] %v3652_v29 }
 0x1b0   : > { %v2478_v34 = vpop.f32.mrf.mxu0  ;;  %v683_v35 = vpop.f32.mrf.mxu1 }
 0x1b1   : > { %v3653_v37 = vpack.c.bf16 %v2642_v27, %v2641_v31  ;;  %v684_v38 = vadd.f32 %v683_v35, %v4517_v3  ;;  %v2479_v36 = vadd.f32 %v2478_v34, %v1855_v23  ;;  %v3593_v40 = vpack.c.bf16 %v1002_v16, %v1001_v32  ;;  %v1875_v23 = vpop.permute.xlu0 %1874  ;;  %v1880_v35 = vpop.permute.xlu1 %1879 }
 0x1b2   : > { %v2482_v41 = vpop.f32.mrf.mxu0  ;;  %v685_v30 = vpop.f32.mrf.mxu1  ;;  %v2643_v42 = vmax.f32 %v2477_v56, 0.0  ;;  %v1005_v61 = vmax.f32 %v682_v45, 0.0 }
 0x1b3   : > { %3103 = vst [vmem:[%s4422_s12 + $0x190] sm:$0xff] %v3653_v37  ;;  %v1006_v43 = vmax.f32 %v684_v38, 0.0  ;;  %v2483_v0 = vadd.f32 %v2482_v41, %v1860_v5  ;;  %v2644_v44 = vmax.f32 %v2479_v36, 0.0  ;;  %1459 = vst [vmem:[%s4532_s19 + $0x1b0] sm:$0xff] %v3593_v40  ;;  %v686_v15 = vadd.f32 %v685_v30, %v4514_v1 }
 0x1b4   : > { %v2484_v46 = vpop.f32.mrf.mxu0  ;;  %v687_v48 = vpop.f32.mrf.mxu1 }
 0x1b5   : > { %v3595_v33 = vpack.c.bf16 %v1006_v43, %v1005_v61  ;;  %v2485_v49 = vadd.f32 %v2484_v46, %v1860_v5  ;;  %v688_v52 = vadd.f32 %v687_v48, %v4517_v3  ;;  %v3654_v53 = vpack.c.bf16 %v2644_v44, %v2643_v42 }
 0x1b6   : > { %v2486_v50 = vpop.f32.mrf.mxu0  ;;  %v691_v47 = vpop.f32.mrf.mxu1  ;;  %v2645_v54 = vmax.f32 %v2483_v0, 0.0  ;;  %v1009_v60 = vmax.f32 %v686_v15, 0.0 }
 0x1b7   : > { %1461 = vst [vmem:[%s4532_s19 + $0x1c0] sm:$0xff] %v3595_v33  ;;  %v2646_v55 = vmax.f32 %v2485_v49, 0.0  ;;  %v692_v58 = vadd.f32 %v691_v47, %v4514_v1  ;;  %v2487_v59 = vadd.f32 %v2486_v50, %v1865_v51  ;;  %v1010_v63 = vmax.f32 %v688_v52, 0.0  ;;  %3104 = vst [vmem:[%s4422_s12 + $0x198] sm:$0xff] %v3654_v53  ;;  %v1885_v33 = vpop.permute.xlu0 %1884 }
 0x1b8   : > { %v2488_v62 = vpop.f32.mrf.mxu0  ;;  %v693_v39 = vpop.f32.mrf.mxu1 }
 0x1b9   : > { %v3655_v4 = vpack.c.bf16 %v2646_v55, %v2645_v54  ;;  %v694_v17 = vadd.f32 %v693_v39, %v4517_v3  ;;  %v2489_v9 = vadd.f32 %v2488_v62, %v1865_v51  ;;  %v3597_v10 = vpack.c.bf16 %v1010_v63, %v1009_v60  ;;  %v1890_v62 = vpop.permute.xlu1 %1889 }
 0x1ba   : > { %v2492_v57 = vpop.f32.mrf.mxu0  ;;  %v695_v6 = vpop.f32.mrf.mxu1  ;;  %v2647_v21 = vmax.f32 %v2487_v59, 0.0  ;;  %v1013_v13 = vmax.f32 %v692_v58, 0.0 }
 0x1bb   : > { %3105 = vst [vmem:[%s4422_s12 + $0x1a0] sm:$0xff] %v3655_v4  ;;  %v1014_v14 = vmax.f32 %v694_v17, 0.0  ;;  %v2493_v18 = vadd.f32 %v2492_v57, %v1870_v2  ;;  %v2648_v19 = vmax.f32 %v2489_v9, 0.0  ;;  %1463 = vst [vmem:[%s4532_s19 + $0x1d0] sm:$0xff] %v3597_v10  ;;  %v696_v8 = vadd.f32 %v695_v6, %v4514_v1 }
 0x1bc   : > { %v2494_v20 = vpop.f32.mrf.mxu0  ;;  %v697_v22 = vpop.f32.mrf.mxu1 }
 0x1bd   : > { %v3599_v24 = vpack.c.bf16 %v1014_v14, %v1013_v13  ;;  %v2495_v25 = vadd.f32 %v2494_v20, %v1870_v2  ;;  %v698_v26 = vadd.f32 %v697_v22, %v4517_v3  ;;  %v3656_v29 = vpack.c.bf16 %v2648_v19, %v2647_v21 }
 0x1be   : > { %v2496_v28 = vpop.f32.mrf.mxu0  ;;  %v734_v7 = vpop.f32.mrf.mxu1  ;;  %v2649_v31 = vmax.f32 %v2493_v18, 0.0  ;;  %v1017_v32 = vmax.f32 %v696_v8, 0.0 }
 0x1bf   : > { %1465 = vst [vmem:[%s4532_s19 + $0x1e0] sm:$0xff] %v3599_v24  ;;  %v2650_v27 = vmax.f32 %v2495_v25, 0.0  ;;  %v735_v45 = vadd.f32 %v734_v7, %v4006_v11  ;;  %v2497_v56 = vadd.f32 %v2496_v28, %v1875_v23  ;;  %v1018_v1 = vmax.f32 %v698_v26, 0.0  ;;  %3106 = vst [vmem:[%s4422_s12 + $0x1a8] sm:$0xff] %v3656_v29  ;;  %v1895_v24 = vpop.permute.xlu0 %1894 }
 0x1c0   : > { %v2498_v16 = vpop.f32.mrf.mxu0  ;;  %v736_v34 = vpop.f32.mrf.mxu1 }
 0x1c1   : > { %v3657_v5 = vpack.c.bf16 %v2650_v27, %v2649_v31  ;;  %v737_v3 = vadd.f32 %v736_v34, %v4008_v12  ;;  %v2499_v37 = vadd.f32 %v2498_v16, %v1875_v23  ;;  %v3601_v38 = vpack.c.bf16 %v1018_v1, %v1017_v32  ;;  %v1900_v16 = vpop.permute.xlu1 %1899 }
 0x1c2   : > { %v2502_v36 = vpop.f32.mrf.mxu0  ;;  %v738_v40 = vpop.f32.mrf.mxu1  ;;  %v2651_v41 = vmax.f32 %v2497_v56, 0.0  ;;  %v895_v30 = vmax.f32 %v735_v45, 0.0 }
 0x1c3   : > { %3107 = vst [vmem:[%s4422_s12 + $0x1b0] sm:$0xff] %v3657_v5  ;;  %v896_v42 = vmax.f32 %v737_v3, 0.0  ;;  %v2503_v61 = vadd.f32 %v2502_v36, %v1880_v35  ;;  %v2652_v43 = vmax.f32 %v2499_v37, 0.0  ;;  %1467 = vst [vmem:[%s4532_s19 + $0x1f0] sm:$0xff] %v3601_v38  ;;  %v739_v0 = vadd.f32 %v738_v40, %v4006_v11 }
 0x1c4   : > { %v2504_v44 = vpop.f32.mrf.mxu0  ;;  %v740_v15 = vpop.f32.mrf.mxu1 }
 0x1c5   : > { %v3540_v46 = vpack.c.bf16 %v896_v42, %v895_v30  ;;  %v2505_v48 = vadd.f32 %v2504_v44, %v1880_v35  ;;  %v741_v49 = vadd.f32 %v740_v15, %v4008_v12  ;;  %v3658_v50 = vpack.c.bf16 %v2652_v43, %v2651_v41 }
 0x1c6   : > { %v2506_v51 = vpop.f32.mrf.mxu0  ;;  %v744_v52 = vpop.f32.mrf.mxu1  ;;  %v2653_v47 = vmax.f32 %v2503_v61, 0.0  ;;  %v899_v58 = vmax.f32 %v739_v0, 0.0 }
 0x1c7   : > { %1406 = vst [vmem:[%s4532_s19 + $0x8] sm:$0xff] %v3540_v46  ;;  %v2654_v53 = vmax.f32 %v2505_v48, 0.0  ;;  %v745_v54 = vadd.f32 %v744_v52, %v4006_v11  ;;  %v2507_v55 = vadd.f32 %v2506_v51, %v1885_v33  ;;  %v900_v59 = vmax.f32 %v741_v49, 0.0  ;;  %3108 = vst [vmem:[%s4422_s12 + $0x1b8] sm:$0xff] %v3658_v50  ;;  %v1905_v46 = vpop.permute.xlu0 %1904 }
 0x1c8   : > { %v2508_v60 = vpop.f32.mrf.mxu0  ;;  %v746_v63 = vpop.f32.mrf.mxu1 }
 0x1c9   : > { %v3659_v39 = vpack.c.bf16 %v2654_v53, %v2653_v47  ;;  %v747_v2 = vadd.f32 %v746_v63, %v4008_v12  ;;  %v2509_v4 = vadd.f32 %v2508_v60, %v1885_v33  ;;  %v3542_v17 = vpack.c.bf16 %v900_v59, %v899_v58  ;;  %v1910_v60 = vpop.permute.xlu1 %1909 }
 0x1ca   : > { %v2512_v9 = vpop.f32.mrf.mxu0  ;;  %v748_v10 = vpop.f32.mrf.mxu1  ;;  %v2655_v57 = vmax.f32 %v2507_v55, 0.0  ;;  %v903_v6 = vmax.f32 %v745_v54, 0.0 }
 0x1cb   : > { %3109 = vst [vmem:[%s4422_s12 + $0x1c0] sm:$0xff] %v3659_v39  ;;  %v904_v21 = vmax.f32 %v747_v2, 0.0  ;;  %v2513_v13 = vadd.f32 %v2512_v9, %v1890_v62  ;;  %v2656_v14 = vmax.f32 %v2509_v4, 0.0  ;;  %1408 = vst [vmem:[%s4532_s19 + $0x18] sm:$0xff] %v3542_v17  ;;  %v749_v18 = vadd.f32 %v748_v10, %v4006_v11 }
 0x1cc   : > { %v2514_v19 = vpop.f32.mrf.mxu0  ;;  %v750_v8 = vpop.f32.mrf.mxu1 }
 0x1cd   : > { %v3544_v20 = vpack.c.bf16 %v904_v21, %v903_v6  ;;  %v2515_v22 = vadd.f32 %v2514_v19, %v1890_v62  ;;  %v751_v25 = vadd.f32 %v750_v8, %v4008_v12  ;;  %v3660_v28 = vpack.c.bf16 %v2656_v14, %v2655_v57 }
 0x1ce   : > { %v2516_v23 = vpop.f32.mrf.mxu0  ;;  %v754_v26 = vpop.f32.mrf.mxu1  ;;  %v2657_v7 = vmax.f32 %v2513_v13, 0.0  ;;  %v907_v45 = vmax.f32 %v749_v18, 0.0 }
 0x1cf   : > { %1410 = vst [vmem:[%s4532_s19 + $0x28] sm:$0xff] %v3544_v20  ;;  %v2658_v29 = vmax.f32 %v2515_v22, 0.0  ;;  %v755_v31 = vadd.f32 %v754_v26, %v4006_v11  ;;  %v2517_v27 = vadd.f32 %v2516_v23, %v1895_v24  ;;  %v908_v56 = vmax.f32 %v751_v25, 0.0  ;;  %3110 = vst [vmem:[%s4422_s12 + $0x1c8] sm:$0xff] %v3660_v28  ;;  %v1915_v13 = vpop.permute.xlu0 %1914 }
 0x1d0   : > { %v2518_v32 = vpop.f32.mrf.mxu0  ;;  %v756_v1 = vpop.f32.mrf.mxu1 }
 0x1d1   : > { %v3661_v34 = vpack.c.bf16 %v2658_v29, %v2657_v7  ;;  %v757_v35 = vadd.f32 %v756_v1, %v4008_v12  ;;  %v2519_v5 = vadd.f32 %v2518_v32, %v1895_v24  ;;  %v3546_v3 = vpack.c.bf16 %v908_v56, %v907_v45 }
 0x1d2   : > { %v2522_v37 = vpop.f32.mrf.mxu0  ;;  %v758_v38 = vpop.f32.mrf.mxu1  ;;  %v2659_v36 = vmax.f32 %v2517_v27, 0.0  ;;  %v911_v40 = vmax.f32 %v755_v31, 0.0 }
 0x1d3   : > { %3111 = vst [vmem:[%s4422_s12 + $0x1d0] sm:$0xff] %v3661_v34  ;;  %v912_v41 = vmax.f32 %v757_v35, 0.0  ;;  %v2523_v30 = vadd.f32 %v2522_v37, %v1900_v16  ;;  %v2660_v42 = vmax.f32 %v2519_v5, 0.0  ;;  %1412 = vst [vmem:[%s4532_s19 + $0x38] sm:$0xff] %v3546_v3  ;;  %v759_v61 = vadd.f32 %v758_v38, %v4006_v11 }
 0x1d4   : > { %v2524_v43 = vpop.f32.mrf.mxu0  ;;  %v760_v0 = vpop.f32.mrf.mxu1 }
 0x1d5   : > { %v3548_v44 = vpack.c.bf16 %v912_v41, %v911_v40  ;;  %v2525_v15 = vadd.f32 %v2524_v43, %v1900_v16  ;;  %v761_v48 = vadd.f32 %v760_v0, %v4008_v12  ;;  %v3662_v51 = vpack.c.bf16 %v2660_v42, %v2659_v36 }
 0x1d6   : > { %v2526_v33 = vpop.f32.mrf.mxu0  ;;  %v764_v49 = vpop.f32.mrf.mxu1  ;;  %v2661_v52 = vmax.f32 %v2523_v30, 0.0  ;;  %v915_v54 = vmax.f32 %v759_v61, 0.0 }
 0x1d7   : > { %1414 = vst [vmem:[%s4532_s19 + $0x48] sm:$0xff] %v3548_v44  ;;  %v2662_v50 = vmax.f32 %v2525_v15, 0.0  ;;  %v765_v47 = vadd.f32 %v764_v49, %v4006_v11  ;;  %v2527_v53 = vadd.f32 %v2526_v33, %v1905_v46  ;;  %v916_v55 = vmax.f32 %v761_v48, 0.0  ;;  %3112 = vst [vmem:[%s4422_s12 + $0x1d8] sm:$0xff] %v3662_v51 }
 0x1d8   : > { %v2528_v58 = vpop.f32.mrf.mxu0  ;;  %v766_v59 = vpop.f32.mrf.mxu1 }
 0x1d9   : > { %v3663_v63 = vpack.c.bf16 %v2662_v50, %v2661_v52  ;;  %v767_v62 = vadd.f32 %v766_v59, %v4008_v12  ;;  %v2529_v39 = vadd.f32 %v2528_v58, %v1905_v46  ;;  %v3550_v2 = vpack.c.bf16 %v916_v55, %v915_v54 }
 0x1da   : > { %v2532_v4 = vpop.f32.mrf.mxu0  ;;  %v768_v17 = vpop.f32.mrf.mxu1  ;;  %v2663_v9 = vmax.f32 %v2527_v53, 0.0  ;;  %v919_v10 = vmax.f32 %v765_v47, 0.0 }
 0x1db   : > { %3113 = vst [vmem:[%s4422_s12 + $0x1e0] sm:$0xff] %v3663_v63  ;;  %v920_v57 = vmax.f32 %v767_v62, 0.0  ;;  %v2533_v6 = vadd.f32 %v2532_v4, %v1910_v60  ;;  %v2664_v21 = vmax.f32 %v2529_v39, 0.0  ;;  %1416 = vst [vmem:[%s4532_s19 + $0x58] sm:$0xff] %v3550_v2  ;;  %v769_v14 = vadd.f32 %v768_v17, %v4006_v11 }
 0x1dc   : > { %v2534_v18 = vpop.f32.mrf.mxu0  ;;  %v770_v19 = vpop.f32.mrf.mxu1 }
 0x1dd   : > { %v3552_v8 = vpack.c.bf16 %v920_v57, %v919_v10  ;;  %v2535_v20 = vadd.f32 %v2534_v18, %v1910_v60  ;;  %v771_v22 = vadd.f32 %v770_v19, %v4008_v12  ;;  %v3664_v24 = vpack.c.bf16 %v2664_v21, %v2663_v9 }
 0x1de   : > { %v774_v25 = vpop.f32.mrf.mxu1  ;;  %v2536_v23 = vpop.f32.mrf.mxu0  ;;  %v2665_v26 = vmax.f32 %v2533_v6, 0.0  ;;  %v923_v31 = vmax.f32 %v769_v14, 0.0 }
 0x1df   : > { %1418 = vst [vmem:[%s4532_s19 + $0x68] sm:$0xff] %v3552_v8  ;;  %v2666_v28 = vmax.f32 %v2535_v20, 0.0  ;;  %v775_v7 = vadd.f32 %v774_v25, %v4006_v11  ;;  %v2537_v29 = vadd.f32 %v2536_v23, %v1915_v13  ;;  %v924_v27 = vmax.f32 %v771_v22, 0.0  ;;  %3114 = vst [vmem:[%s4422_s12 + $0x1e8] sm:$0xff] %v3664_v24 }
 0x1e0   : > { %v776_v45 = vpop.f32.mrf.mxu1  ;;  %v2538_v56 = vpop.f32.mrf.mxu0 }
 0x1e1   : > { %v3665_v32 = vpack.c.bf16 %v2666_v28, %v2665_v26  ;;  %v777_v1 = vadd.f32 %v776_v45, %v4008_v12  ;;  %v2539_v16 = vadd.f32 %v2538_v56, %v1915_v13  ;;  %v3554_v34 = vpack.c.bf16 %v924_v27, %v923_v31 }
 0x1e2   : > { %v2667_v35 = vmax.f32 %v2537_v29, 0.0  ;;  %v778_v5 = vpop.f32.mrf.mxu1  ;;  %v927_v3 = vmax.f32 %v775_v7, 0.0 }
 0x1e3   : > { %3115 = vst [vmem:[%s4422_s12 + $0x1f0] sm:$0xff] %v3665_v32  ;;  %v928_v37 = vmax.f32 %v777_v1, 0.0  ;;  %v2668_v38 = vmax.f32 %v2539_v16, 0.0  ;;  %v779_v36 = vadd.f32 %v778_v5, %v4006_v11  ;;  %1420 = vst [vmem:[%s4532_s19 + $0x78] sm:$0xff] %v3554_v34 }
 0x1e4   : > { %v780_v40 = vpop.f32.mrf.mxu1 }
 0x1e5   : > { %v3556_v41 = vpack.c.bf16 %v928_v37, %v927_v3  ;;  %v3666_v30 = vpack.c.bf16 %v2668_v38, %v2667_v35  ;;  %v781_v42 = vadd.f32 %v780_v40, %v4008_v12  ;;  %v931_v43 = vmax.f32 %v779_v36, 0.0 }
 0x1e6   : > { %v784_v61 = vpop.f32.mrf.mxu1 }
 0x1e7   : > { %1422 = vst [vmem:[%s4532_s19 + $0x88] sm:$0xff] %v3556_v41  ;;  %3116 = vst [vmem:[%s4422_s12 + $0x1f8] sm:$0xff] %v3666_v30  ;;  %v932_v0 = vmax.f32 %v781_v42, 0.0  ;;  %v785_v44 = vadd.f32 %v784_v61, %v4006_v11 }
 0x1e8   : > { %v786_v15 = vpop.f32.mrf.mxu1 }
 0x1e9   : > { %3784 = shalt.err (!%p3781_p5)
}
 0x1ea   : > { %s3785_s12 = scalar_lea.hbm %s4718_s8, 8192  ;;  %s3789_s16 = scalar_lea.hbm %s4877_s7, 16384 }
 0x1eb   : > { %p3786_p6 = scmp.ne.s32.totalorder %s4718_s8, %s3785_s12  ;;  %p3790_p10 = scmp.lt.s32.totalorder %s4718_s8, %s4877_s7 }
 0x1ec   : > { %p3791_p11 = scmp.lt.s32.totalorder %s3789_s16, %s3785_s12 }
 0x1ed   : > { %p3787_p7 = pnand %p3786_p6, %p3967_p4 }
 0x1ee   : > { %p3792_p12 = por %p3791_p11, %p3790_p10 }
 0x1ef   : > { %p3788_p9 = pneg %p3787_p7 }
 0x1f1   : > { %p3793_p13 = pnand %p3792_p12, %p3788_p9 }
 0x1f3   : > { %3796 = shalt.err (!%p3793_p13)
}
 0x1f4   : > { %s3882_s15 = smov 128   ;;  %s3883_s17 = smov 8   ;;  %v3558_v46 = vpack.c.bf16 %v932_v0, %v931_v43  ;;  %v787_v48 = vadd.f32 %v786_v15, %v4008_v12  ;;  %v788_v33 = vpop.f32.mrf.mxu1  ;;  %v935_v49 = vmax.f32 %v785_v44, 0.0 }
 0x1f5   : > { %s4881_s18 = scalar_lea.sflag [#allocation5], %s4399_s21  ;;  %v789_v52 = vadd.f32 %v788_v33, %v4006_v11  ;;  %s3139_s22 = sshll.u32 %s4532_s19, 4  ;;  %s4822_s22 = int_to_ptr.vmem [resolvable:$true] %s3139_s22 }
 0x1f6   : > { %3670 = dma.vmem_to_hbm [thread:$0]  (%p3967_p4), %s4720_s20, 8192, %s4718_s8, %s4881_s18, %s3882_s15, %s3882_s15, %s3883_s17   ;;  %v936_v51 = vmax.f32 %v787_v48, 0.0  ;;  %v790_v50 = vpop.f32.mrf.mxu1 }
 0x1f7   : > { %1424 = vst [vmem:[%s4532_s19 + $0x98] sm:$0xff] %v3558_v46  ;;  %v791_v53 = vadd.f32 %v790_v50, %v4008_v12  ;;  %v939_v55 = vmax.f32 %v789_v52, 0.0  ;;  %s4882_s20 = sshll.u32 %s3869_s27, 13  ;;  %s3118_s23 = scalar_lea.sflag [#allocation3], %s4399_s21 }
 0x1f8   : > { %v3560_v47 = vpack.c.bf16 %v936_v51, %v935_v49  ;;  %v794_v54 = vpop.f32.mrf.mxu1  ;;  %s4820_s12 = scalar_lea.hbm %s4876_s6, %s4882_s20  ;;  %s3797_s30 = scalar_lea.vmem %s4822_s22, 8192 }
 0x1f9   : > { %v940_v58 = vmax.f32 %v791_v53, 0.0  ;;  %v795_v59 = vadd.f32 %v794_v54, %v4006_v11  ;;  %p3798_p0 = scmp.ne.s32.totalorder %s4822_s22, %s3797_s30  ;;  %s3884_s16 = smov [#allocation2]  }
 0x1fa   : > { %1426 = vst [vmem:[%s4532_s19 + $0xa8] sm:$0xff] %v3560_v47  ;;  %v796_v60 = vpop.f32.mrf.mxu1  ;;  %s3801_s27 = sshll.u32 %s3884_s16, 4  ;;  %s3802_s27 = int_to_ptr.vmem [resolvable:$false] %s3801_s27 }
 0x1fb   : > { %v3562_v63 = vpack.c.bf16 %v940_v58, %v939_v55  ;;  %v797_v62 = vadd.f32 %v796_v60, %v4008_v12  ;;  %v943_v2 = vmax.f32 %v795_v59, 0.0  ;;  %p3799_p1 = pnand %p3798_p0, %p3967_p4  ;;  %s3803_s15 = scalar_lea.vmem %s3802_s27, 16384 }
 0x1fc   : > { %v798_v39 = vpop.f32.mrf.mxu1  ;;  %p3804_p3 = scmp.lt.s32.totalorder %s4822_s22, %s3802_s27  ;;  %p3805_p5 = scmp.lt.s32.totalorder %s3803_s15, %s3797_s30 }
 0x1fd   : > { %1428 = vst [vmem:[%s4532_s19 + $0xb8] sm:$0xff] %v3562_v63  ;;  %v944_v4 = vmax.f32 %v797_v62, 0.0  ;;  %v799_v17 = vadd.f32 %v798_v39, %v4006_v11  ;;  %p3800_p2 = pneg %p3799_p1 }
 0x1fe   : > { %v800_v9 = vpop.f32.mrf.mxu1  ;;  %p3806_p6 = por %p3805_p5, %p3804_p3 }
 0x1ff   : > { %v3564_v10 = vpack.c.bf16 %v944_v4, %v943_v2  ;;  %v801_v57 = vadd.f32 %v800_v9, %v4008_v12  ;;  %v947_v21 = vmax.f32 %v799_v17, 0.0 }
 0x200   : > { %v804_v6 = vpop.f32.mrf.mxu1  ;;  %p3807_p7 = pnand %p3806_p6, %p3800_p2 }
 0x201   : > { %1430 = vst [vmem:[%s4532_s19 + $0xc8] sm:$0xff] %v3564_v10  ;;  %v948_v13 = vmax.f32 %v801_v57, 0.0  ;;  %v805_v14 = vadd.f32 %v804_v6, %v4006_v11 }
 0x202   : > { %v806_v18 = vpop.f32.mrf.mxu1 }
 0x203   : > { %v3566_v19 = vpack.c.bf16 %v948_v13, %v947_v21  ;;  %v807_v8 = vadd.f32 %v806_v18, %v4008_v12  ;;  %v951_v22 = vmax.f32 %v805_v14, 0.0 }
 0x204   : > { %v808_v20 = vpop.f32.mrf.mxu1 }
 0x205   : > { %1432 = vst [vmem:[%s4532_s19 + $0xd8] sm:$0xff] %v3566_v19  ;;  %v952_v24 = vmax.f32 %v807_v8, 0.0  ;;  %v809_v25 = vadd.f32 %v808_v20, %v4006_v11 }
 0x206   : > { %v810_v23 = vpop.f32.mrf.mxu1 }
 0x207   : > { %v3568_v26 = vpack.c.bf16 %v952_v24, %v951_v22  ;;  %v811_v28 = vadd.f32 %v810_v23, %v4008_v12  ;;  %v955_v29 = vmax.f32 %v809_v25, 0.0 }
 0x208   : > { %v814_v7 = vpop.f32.mrf.mxu1 }
 0x209   : > { %1434 = vst [vmem:[%s4532_s19 + $0xe8] sm:$0xff] %v3568_v26  ;;  %v956_v31 = vmax.f32 %v811_v28, 0.0  ;;  %v815_v27 = vadd.f32 %v814_v7, %v4006_v11 }
 0x20a   : > { %v816_v45 = vpop.f32.mrf.mxu1 }
 0x20b   : > { %v3570_v56 = vpack.c.bf16 %v956_v31, %v955_v29  ;;  %v817_v32 = vadd.f32 %v816_v45, %v4008_v12  ;;  %v959_v16 = vmax.f32 %v815_v27, 0.0 }
 0x20c   : > { %v818_v1 = vpop.f32.mrf.mxu1 }
 0x20d   : > { %1436 = vst [vmem:[%s4532_s19 + $0xf8] sm:$0xff] %v3570_v56  ;;  %v960_v34 = vmax.f32 %v817_v32, 0.0  ;;  %v819_v35 = vadd.f32 %v818_v1, %v4006_v11 }
 0x20e   : > { %v820_v5 = vpop.f32.mrf.mxu1 }
 0x20f   : > { %v3572_v3 = vpack.c.bf16 %v960_v34, %v959_v16  ;;  %v821_v37 = vadd.f32 %v820_v5, %v4008_v12  ;;  %v963_v36 = vmax.f32 %v819_v35, 0.0 }
 0x210   : > { %v824_v38 = vpop.f32.mrf.mxu1 }
 0x211   : > { %1438 = vst [vmem:[%s4532_s19 + $0x108] sm:$0xff] %v3572_v3  ;;  %v964_v40 = vmax.f32 %v821_v37, 0.0  ;;  %v825_v41 = vadd.f32 %v824_v38, %v4006_v11 }
 0x212   : > { %v826_v30 = vpop.f32.mrf.mxu1 }
 0x213   : > { %v3574_v42 = vpack.c.bf16 %v964_v40, %v963_v36  ;;  %v827_v61 = vadd.f32 %v826_v30, %v4008_v12  ;;  %v967_v0 = vmax.f32 %v825_v41, 0.0 }
 0x214   : > { %v828_v43 = vpop.f32.mrf.mxu1 }
 0x215   : > { %1440 = vst [vmem:[%s4532_s19 + $0x118] sm:$0xff] %v3574_v42  ;;  %v968_v44 = vmax.f32 %v827_v61, 0.0  ;;  %v829_v15 = vadd.f32 %v828_v43, %v4006_v11 }
 0x216   : > { %v830_v46 = vpop.f32.mrf.mxu1 }
 0x217   : > { %v3576_v48 = vpack.c.bf16 %v968_v44, %v967_v0  ;;  %v831_v33 = vadd.f32 %v830_v46, %v4008_v12  ;;  %v971_v51 = vmax.f32 %v829_v15, 0.0 }
 0x218   : > { %v834_v49 = vpop.f32.mrf.mxu1 }
 0x219   : > { %1442 = vst [vmem:[%s4532_s19 + $0x128] sm:$0xff] %v3576_v48  ;;  %v972_v52 = vmax.f32 %v831_v33, 0.0  ;;  %v835_v50 = vadd.f32 %v834_v49, %v4006_v11 }
 0x21a   : > { %v836_v47 = vpop.f32.mrf.mxu1 }
 0x21b   : > { %v3578_v53 = vpack.c.bf16 %v972_v52, %v971_v51  ;;  %v837_v54 = vadd.f32 %v836_v47, %v4008_v12  ;;  %v975_v58 = vmax.f32 %v835_v50, 0.0 }
 0x21c   : > { %v838_v55 = vpop.f32.mrf.mxu1 }
 0x21d   : > { %1444 = vst [vmem:[%s4532_s19 + $0x138] sm:$0xff] %v3578_v53  ;;  %v976_v59 = vmax.f32 %v837_v54, 0.0  ;;  %v839_v60 = vadd.f32 %v838_v55, %v4006_v11 }
 0x21e   : > { %v840_v63 = vpop.f32.mrf.mxu1 }
 0x21f   : > { %v3580_v62 = vpack.c.bf16 %v976_v59, %v975_v58  ;;  %v841_v39 = vadd.f32 %v840_v63, %v4008_v12  ;;  %v979_v4 = vmax.f32 %v839_v60, 0.0 }
 0x220   : > { %v844_v2 = vpop.f32.mrf.mxu1 }
 0x221   : > { %1446 = vst [vmem:[%s4532_s19 + $0x148] sm:$0xff] %v3580_v62  ;;  %v980_v17 = vmax.f32 %v841_v39, 0.0  ;;  %v845_v9 = vadd.f32 %v844_v2, %v4006_v11 }
 0x222   : > { %v846_v10 = vpop.f32.mrf.mxu1 }
 0x223   : > { %v3582_v57 = vpack.c.bf16 %v980_v17, %v979_v4  ;;  %v847_v6 = vadd.f32 %v846_v10, %v4008_v12  ;;  %v983_v13 = vmax.f32 %v845_v9, 0.0 }
 0x224   : > { %v848_v21 = vpop.f32.mrf.mxu1 }
 0x225   : > { %1448 = vst [vmem:[%s4532_s19 + $0x158] sm:$0xff] %v3582_v57  ;;  %v984_v14 = vmax.f32 %v847_v6, 0.0  ;;  %v849_v18 = vadd.f32 %v848_v21, %v4006_v11 }
 0x226   : > { %v850_v19 = vpop.f32.mrf.mxu1 }
 0x227   : > { %v3584_v8 = vpack.c.bf16 %v984_v14, %v983_v13  ;;  %v851_v20 = vadd.f32 %v850_v19, %v4008_v12  ;;  %v987_v24 = vmax.f32 %v849_v18, 0.0 }
 0x228   : > { %v854_v22 = vpop.f32.mrf.mxu1 }
 0x229   : > { %1450 = vst [vmem:[%s4532_s19 + $0x168] sm:$0xff] %v3584_v8  ;;  %v988_v25 = vmax.f32 %v851_v20, 0.0  ;;  %v855_v23 = vadd.f32 %v854_v22, %v4006_v11 }
 0x22a   : > { %v856_v26 = vpop.f32.mrf.mxu1 }
 0x22b   : > { %v3586_v28 = vpack.c.bf16 %v988_v25, %v987_v24  ;;  %v857_v7 = vadd.f32 %v856_v26, %v4008_v12  ;;  %v991_v31 = vmax.f32 %v855_v23, 0.0 }
 0x22c   : > { %v858_v29 = vpop.f32.mrf.mxu1 }
 0x22d   : > { %1452 = vst [vmem:[%s4532_s19 + $0x178] sm:$0xff] %v3586_v28  ;;  %v992_v27 = vmax.f32 %v857_v7, 0.0  ;;  %v859_v45 = vadd.f32 %v858_v29, %v4006_v11 }
 0x22e   : > { %v860_v56 = vpop.f32.mrf.mxu1 }
 0x22f   : > { %v3588_v32 = vpack.c.bf16 %v992_v27, %v991_v31  ;;  %v861_v1 = vadd.f32 %v860_v56, %v4008_v12  ;;  %v995_v34 = vmax.f32 %v859_v45, 0.0 }
 0x230   : > { %v864_v16 = vpop.f32.mrf.mxu1 }
 0x231   : > { %1454 = vst [vmem:[%s4532_s19 + $0x188] sm:$0xff] %v3588_v32  ;;  %v996_v35 = vmax.f32 %v861_v1, 0.0  ;;  %v865_v5 = vadd.f32 %v864_v16, %v4006_v11 }
 0x232   : > { %v866_v3 = vpop.f32.mrf.mxu1 }
 0x233   : > { %v3590_v37 = vpack.c.bf16 %v996_v35, %v995_v34  ;;  %v867_v38 = vadd.f32 %v866_v3, %v4008_v12  ;;  %v999_v40 = vmax.f32 %v865_v5, 0.0 }
 0x234   : > { %v868_v36 = vpop.f32.mrf.mxu1 }
 0x235   : > { %1456 = vst [vmem:[%s4532_s19 + $0x198] sm:$0xff] %v3590_v37  ;;  %v1000_v41 = vmax.f32 %v867_v38, 0.0  ;;  %v869_v30 = vadd.f32 %v868_v36, %v4006_v11 }
 0x236   : > { %v870_v42 = vpop.f32.mrf.mxu1 }
 0x237   : > { %v3592_v61 = vpack.c.bf16 %v1000_v41, %v999_v40  ;;  %v871_v43 = vadd.f32 %v870_v42, %v4008_v12  ;;  %v1003_v44 = vmax.f32 %v869_v30, 0.0 }
 0x238   : > { %v874_v0 = vpop.f32.mrf.mxu1 }
 0x239   : > { %1458 = vst [vmem:[%s4532_s19 + $0x1a8] sm:$0xff] %v3592_v61  ;;  %v1004_v15 = vmax.f32 %v871_v43, 0.0  ;;  %v875_v46 = vadd.f32 %v874_v0, %v4006_v11 }
 0x23a   : > { %v876_v48 = vpop.f32.mrf.mxu1 }
 0x23b   : > { %v3594_v33 = vpack.c.bf16 %v1004_v15, %v1003_v44  ;;  %v877_v49 = vadd.f32 %v876_v48, %v4008_v12  ;;  %v1007_v52 = vmax.f32 %v875_v46, 0.0 }
 0x23c   : > { %v878_v51 = vpop.f32.mrf.mxu1 }
 0x23d   : > { %1460 = vst [vmem:[%s4532_s19 + $0x1b8] sm:$0xff] %v3594_v33  ;;  %v1008_v50 = vmax.f32 %v877_v49, 0.0  ;;  %v879_v47 = vadd.f32 %v878_v51, %v4006_v11 }
 0x23e   : > { %v880_v53 = vpop.f32.mrf.mxu1 }
 0x23f   : > { %v3596_v54 = vpack.c.bf16 %v1008_v50, %v1007_v52  ;;  %v881_v55 = vadd.f32 %v880_v53, %v4008_v12  ;;  %v1011_v59 = vmax.f32 %v879_v47, 0.0 }
 0x240   : > { %v884_v58 = vpop.f32.mrf.mxu1 }
 0x241   : > { %1462 = vst [vmem:[%s4532_s19 + $0x1c8] sm:$0xff] %v3596_v54  ;;  %v1012_v60 = vmax.f32 %v881_v55, 0.0  ;;  %v885_v63 = vadd.f32 %v884_v58, %v4006_v11 }
 0x242   : > { %v886_v62 = vpop.f32.mrf.mxu1 }
 0x243   : > { %v3598_v39 = vpack.c.bf16 %v1012_v60, %v1011_v59  ;;  %v887_v2 = vadd.f32 %v886_v62, %v4008_v12  ;;  %v1015_v17 = vmax.f32 %v885_v63, 0.0 }
 0x244   : > { %v888_v4 = vpop.f32.mrf.mxu1 }
 0x245   : > { %1464 = vst [vmem:[%s4532_s19 + $0x1d8] sm:$0xff] %v3598_v39  ;;  %v1016_v9 = vmax.f32 %v887_v2, 0.0  ;;  %v889_v10 = vadd.f32 %v888_v4, %v4006_v11 }
 0x246   : > { %v890_v57 = vpop.f32.mrf.mxu1 }
 0x247   : > { %v3600_v6 = vpack.c.bf16 %v1016_v9, %v1015_v17  ;;  %v891_v21 = vadd.f32 %v890_v57, %v4008_v12  ;;  %v1019_v13 = vmax.f32 %v889_v10, 0.0 }
 0x249   : > { %1466 = vst [vmem:[%s4532_s19 + $0x1e8] sm:$0xff] %v3600_v6  ;;  %v1020_v14 = vmax.f32 %v891_v21, 0.0 }
 0x24b   : > { %v3602_v11 = vpack.c.bf16 %v1020_v14, %v1019_v13 }
 0x24d   : > { %1468 = vst [vmem:[%s4532_s19 + $0x1f8] sm:$0xff] %v3602_v11 }
 0x24e   : > { %3810 = shalt.err (!%p3807_p7)
}
 0x24f   : > { %s3811_s19 = scalar_lea.hbm %s4820_s12, 8192  ;;  %s3815_s20 = scalar_lea.hbm %s4876_s6, 16384 }
 0x250   : > { %p3812_p9 = scmp.ne.s32.totalorder %s4820_s12, %s3811_s19  ;;  %p3816_p12 = scmp.lt.s32.totalorder %s4820_s12, %s4876_s6 }
 0x251   : > { %p3817_p13 = scmp.lt.s32.totalorder %s3815_s20, %s3811_s19 }
 0x252   : > { %p3813_p10 = pnand %p3812_p9, %p3967_p4 }
 0x253   : > { %p3818_p0 = por %p3817_p13, %p3816_p12 }
 0x254   : > { %p3814_p11 = pneg %p3813_p10 }
 0x256   : > { %p3819_p1 = pnand %p3818_p0, %p3814_p11 }
 0x258   : > { %3822 = shalt.err (!%p3819_p1)
}
 0x259   : > { %s3885_s30 = smov 256   ;;  %s3886_s16 = smov 16  }
 0x25a   : > { %3669 = dma.vmem_to_hbm [thread:$0]  (%p3967_p4), %s4822_s22, 8192, %s4820_s12, %s3118_s23, %s3885_s30, %s3885_s30, %s3886_s16  }
 0x25b PF: > { %p3680_p2 = scmp.ge.s32.totalorder %s3877_s29, 2  ;;  %s3172_s27 = sand.u32 1, %s3857_s24  }
 0x25c   : > { %s3173_s15 = scalar_lea.sflag [#allocation3], %s3172_s27 }
 0x25d   : > { %p3674_p3 = pnand %p3680_p2, %p3974_p8 }
 0x25f   : > { %p3675_p5 = pneg %p3674_p3 }
 0x261   : > { %3848 = dma.done.wait (%p3675_p5), %s3173_s15, 8192  }
 0x262   : > { %3850 = vsyncadd (%p3675_p5), %s3173_s15, 4294959104  ;;  %s3182_s19 = scalar_lea.sflag [#allocation5], %s3172_s27 }
 0x263   : > { %3852 = dma.done.wait (%p3675_p5), %s3182_s19, 8192  }
 0x264   : > { %3854 = vsyncadd (%p3675_p5), %s3182_s19, 4294959104  ;;  %s24_s29 = sadd.s32 1, %s3877_s29   ;;  %s4883_s24 = smov %s3861_s25 }
 0x265   : > { %p21_p6 = scmp.ge.s32.totalorder %s24_s29, 4   ;;  %s4884_s25 = smov %s3865_s26 }
 0x266   : > { %s4885_s26 = smov %s3980_s14  ;;  %s4886_s27 = smov %s3873_s28 }
 0x267   : > { %s4887_s28 = smov %s4889_s9  ;;  %23 = sbr.rel (!%p21_p6) target bundleno = 6 (0x6), region = 99 }
 0x26c   :  { %3187 = vsyncpa [#allocation3], 1 }
 0x26d   :  { %3189 = vsyncpa [#allocation3 + $0x1], 1 }
 0x26e   :  { %3190 = vsyncpa [#allocation5], 1 }
 0x26f   :  { %3192 = vsyncpa [#allocation5 + $0x1], 1 }

</bundles_post_ra>
